<compile_context>
chip_gen: v7x
topology: tpu7x:2x2x1
jax: 0.10.0
libtpu: 0.0.40
codegen_flags: <defaults>
</compile_context>

<pallas_src>
import functools
import jax
import jax.numpy as jnp
from jax import lax
from jax.experimental import pallas as pl
from jax.experimental.pallas import tpu as pltpu


# ---------------------------------------------------------------------------
# In-kernel helpers (f32 elementwise math; v5e has no bf16 VPU/EUP)
# ---------------------------------------------------------------------------
def _layernorm(x, gamma, beta, eps=1e-5):
    # x: (T, C) f32 ; gamma/beta: (1, C) f32
    mu = jnp.mean(x, axis=-1, keepdims=True)
    var = jnp.mean((x - mu) ** 2, axis=-1, keepdims=True)
    return (x - mu) * lax.rsqrt(var + eps) * gamma + beta


# ---------------------------------------------------------------------------
# Fused full-model kernel: all blocks + final LN + lm_head for one batch element.
#
# Stacked per-layer weight layouts (host-prepared so the kernel never needs
# in-kernel reshapes/transposes of activations):
#   wqkv_h : (L, H, C, 3d)   bqkv_h : (L, H, 1, 3d)
#   wproj_h: (L, H, d, C)    bproj  : (L, 1, C)
#   w1     : (L, C, 4C)      b1     : (L, 1, 4C)
#   w2     : (L, 4C, C)      b2     : (L, 1, C)
# ---------------------------------------------------------------------------
def gpt2_kernel(x_ref,
                ln1g, ln1b, wqkv_h, bqkv_h, wproj_h, bproj,
                ln2g, ln2b, w1, b1, w2, b2,
                lnfg, lnfb, wlm, blm,
                o_ref, *, n_layers, num_heads, head_size):
    x = x_ref[0]                                        # (T, C) f32
    T, C = x.shape
    H, d = num_heads, head_size
    scale = d ** (-0.5)

    # causal mask computed once, reused by every layer (additive form)
    rows = lax.broadcasted_iota(jnp.int32, (T, T), 0)
    cols = lax.broadcasted_iota(jnp.int32, (T, T), 1)
    neg_mask = jnp.where(rows >= cols, 0.0, -1e30).astype(jnp.float32)[None]  # (1,T,T)

    for li in range(n_layers):                          # static unroll; all-resident
        # --- ln1 + causal self-attention, batched over heads ---------------
        h = _layernorm(x, ln1g[li], ln1b[li])           # (T, C) f32
        hb = jnp.broadcast_to(h.astype(jnp.bfloat16), (H, T, C))

        # fused QKV projection per head: 'htc,hce->hte' -> (H, T, 3d), f32 acc
        qkv = lax.dot_general(hb, wqkv_h[li],
                              (((2,), (1,)), ((0,), (0,))),
                              preferred_element_type=jnp.float32) + bqkv_h[li]
        q = qkv[..., 0 * d:1 * d].astype(jnp.bfloat16)  # (H, T, d)
        k = qkv[..., 1 * d:2 * d].astype(jnp.bfloat16)
        v = qkv[..., 2 * d:3 * d].astype(jnp.bfloat16)

        # scores: 'htd,hsd->hts' (one batched MXU call for all heads)
        s = lax.dot_general(q, k, (((2,), (2,)), ((0,), (0,))),
                            preferred_element_type=jnp.float32) * scale + neg_mask
        s = s - jnp.max(s, axis=-1, keepdims=True)
        p = jnp.exp(s)
        # softmax denominator via EUP reciprocal (free slot) instead of VPU divide
        p = p * pl.reciprocal(jnp.sum(p, axis=-1, keepdims=True), approx=True)

        # 'hts,hsd->htd'
        o = lax.dot_general(p.astype(jnp.bfloat16), v,
                            (((2,), (1,)), ((0,), (0,))),
                            preferred_element_type=jnp.float32)        # (H,T,d)

        # output projection as batched per-head matmul 'htd,hdc->htc' then a
        # reduce over heads (f32 adds) — avoids lane-axis concatenate.
        attn = lax.dot_general(o.astype(jnp.bfloat16), wproj_h[li],
                               (((2,), (1,)), ((0,), (0,))),
                               preferred_element_type=jnp.float32)     # (H,T,C)
        x = x + jnp.sum(attn, axis=0) + bproj[li]

        # --- ln2 + feed-forward --------------------------------------------
        h2 = _layernorm(x, ln2g[li], ln2b[li])
        f = jnp.dot(h2.astype(jnp.bfloat16), w1[li],
                    preferred_element_type=jnp.float32) + b1[li]
        f = jnp.maximum(f, 0.0)                                         # ReLU
        x = x + jnp.dot(f.astype(jnp.bfloat16), w2[li],
                        preferred_element_type=jnp.float32) + b2[li]

    # --- final layernorm + lm_head (lane-dense, vocab padded to *128) -------
    hf = _layernorm(x, lnfg[...], lnfb[...])
    o_ref[0] = jnp.dot(hf.astype(jnp.bfloat16), wlm[...],
                       preferred_element_type=jnp.float32) + blm[...]

    # TODO(synk): for real GPT2 sizes (C=768, T=1024, V=50257) this single-kernel
    # fusion must be re-tiled: flash-style online softmax over key tiles, K/N
    # tiled QKV/MLP matmuls with f32 accumulators, and a vocab grid axis for the
    # lm_head, so weights/activations fit v7x's 64 MiB VMEM.


# ---------------------------------------------------------------------------
# Wrapper around pallas_call
# ---------------------------------------------------------------------------
def gpt2_pallas(x, kp, *, n_layers, num_heads, head_size):
    B, T, C = x.shape
    v_pad = kp["wlm_pad"].shape[1]
    weights = [kp["ln1g"], kp["ln1b"], kp["wqkv_h"], kp["bqkv_h"],
               kp["wproj_h"], kp["bproj"], kp["ln2g"], kp["ln2b"],
               kp["w1"], kp["b1"], kp["w2"], kp["b2"],
               kp["lnfg"], kp["lnfb"], kp["wlm_pad"], kp["blm_pad"]]

    def full_spec(a):
        zeros = (0,) * a.ndim
        return pl.BlockSpec(a.shape, lambda b, _z=zeros: _z)   # resident across grid

    return pl.pallas_call(
        functools.partial(gpt2_kernel, n_layers=n_layers,
                          num_heads=num_heads, head_size=head_size),
        grid=(B,),
        in_specs=[pl.BlockSpec((1, T, C), lambda b: (b, 0, 0))]
                 + [full_spec(w) for w in weights],
        out_specs=pl.BlockSpec((1, T, v_pad), lambda b: (b, 0, 0)),
        out_shape=jax.ShapeDtypeStruct((B, T, v_pad), jnp.float32),
        compiler_params=pltpu.CompilerParams(dimension_semantics=("parallel",)),
    )(x, *weights)


def gpt2_forward(inputs, kp, *, n_layers, num_heads, head_size, vocab_size):
    """inputs: (B, T) int32 token ids. Returns logits (B, T, vocab_size)."""
    B, T = inputs.shape
    # Embedding gathers are index glue, done in plain JAX (no clean Pallas gather
    # at these tiny shapes); everything dense runs in the fused Pallas kernel.
    tok = jnp.take(kp["tok_table"], inputs, axis=0)          # (B, T, C)
    pos = kp["pos_table"][:T]                                # (T, C)
    x = tok + pos[None, :, :]
    logits = gpt2_pallas(x, kp, n_layers=n_layers,
                         num_heads=num_heads, head_size=head_size)
    return logits[..., :vocab_size]


# ---------------------------------------------------------------------------
# Parameter init (torch-Linear-style uniform; LN gamma=1, beta=0).
# Matmul weights stored in bf16 (halves VMEM/HBM traffic); biases/LN/embeds f32.
# ---------------------------------------------------------------------------
def init_params(key, vocab_size, context_length, n_embds, n_layers):
    def linear(k, fan_in, fan_out):
        k1, k2 = jax.random.split(k)
        bound = 1.0 / (fan_in ** 0.5)
        W = jax.random.uniform(k1, (fan_in, fan_out), jnp.float32, -bound, bound)
        b = jax.random.uniform(k2, (1, fan_out), jnp.float32, -bound, bound)
        return W.astype(jnp.bfloat16), b

    keys = jax.random.split(key, 3 + n_layers)
    params = {
        "tok_table": jax.random.normal(keys[0], (vocab_size, n_embds), jnp.float32),
        "pos_table": jax.random.normal(keys[1], (context_length, n_embds), jnp.float32),
        "lnfg": jnp.ones((1, n_embds), jnp.float32),
        "lnfb": jnp.zeros((1, n_embds), jnp.float32),
        "blocks": [],
    }
    params["wlm"], params["blm"] = linear(keys[2], n_embds, vocab_size)

    for li in range(n_layers):
        k = keys[3 + li]
        k_attn, k_proj, k_f1, k_f2 = jax.random.split(k, 4)
        wqkv, bqkv = linear(k_attn, n_embds, 3 * n_embds)
        wproj, bproj = linear(k_proj, n_embds, n_embds)
        w1, b1 = linear(k_f1, n_embds, 4 * n_embds)
        w2, b2 = linear(k_f2, 4 * n_embds, n_embds)
        params["blocks"].append({
            "ln1g": jnp.ones((1, n_embds), jnp.float32),
            "ln1b": jnp.zeros((1, n_embds), jnp.float32),
            "wqkv": wqkv, "bqkv": bqkv, "wproj": wproj, "bproj": bproj,
            "ln2g": jnp.ones((1, n_embds), jnp.float32),
            "ln2b": jnp.zeros((1, n_embds), jnp.float32),
            "w1": w1, "b1": b1, "w2": w2, "b2": b2,
        })
    return params


def prepare_kernel_params(params, num_heads, head_size):
    """Rearrange torch-layout weights into stacked per-layer, per-head layouts."""
    H, d = num_heads, head_size
    C = params["tok_table"].shape[1]
    vocab = params["wlm"].shape[1]
    v_pad = ((vocab + 127) // 128) * 128   # lane-dense lm_head (multiple of 128)

    wlm_pad = jnp.zeros((C, v_pad), jnp.bfloat16).at[:, :vocab].set(
        params["wlm"].astype(jnp.bfloat16))
    blm_pad = jnp.zeros((1, v_pad), jnp.float32).at[:, :vocab].set(
        params["blm"].astype(jnp.float32))

    acc = {k: [] for k in ["ln1g", "ln1b", "wqkv_h", "bqkv_h", "wproj_h", "bproj",
                           "ln2g", "ln2b", "w1", "b1", "w2", "b2"]}
    for p in params["blocks"]:
        wq = p["wqkv"][:, :C].reshape(C, H, d)
        wk = p["wqkv"][:, C:2 * C].reshape(C, H, d)
        wv = p["wqkv"][:, 2 * C:].reshape(C, H, d)
        wqkv_h = jnp.transpose(jnp.concatenate([wq, wk, wv], axis=-1), (1, 0, 2))
        bq = p["bqkv"][0, :C].reshape(H, d)
        bk = p["bqkv"][0, C:2 * C].reshape(H, d)
        bv = p["bqkv"][0, 2 * C:].reshape(H, d)
        bqkv_h = jnp.concatenate([bq, bk, bv], axis=-1)[:, None, :]     # (H,1,3d)

        acc["ln1g"].append(p["ln1g"]); acc["ln1b"].append(p["ln1b"])
        acc["wqkv_h"].append(wqkv_h.astype(jnp.bfloat16))
        acc["bqkv_h"].append(bqkv_h.astype(jnp.float32))
        acc["wproj_h"].append(p["wproj"].reshape(H, d, C).astype(jnp.bfloat16))
        acc["bproj"].append(p["bproj"].astype(jnp.float32))
        acc["ln2g"].append(p["ln2g"]); acc["ln2b"].append(p["ln2b"])
        acc["w1"].append(p["w1"].astype(jnp.bfloat16))
        acc["b1"].append(p["b1"].astype(jnp.float32))
        acc["w2"].append(p["w2"].astype(jnp.bfloat16))
        acc["b2"].append(p["b2"].astype(jnp.float32))

    kp = {"tok_table": params["tok_table"], "pos_table": params["pos_table"],
          "lnfg": params["lnfg"], "lnfb": params["lnfb"],
          "wlm_pad": wlm_pad, "blm_pad": blm_pad}
    for k, v in acc.items():
        kp[k] = jnp.stack(v, axis=0)
    return kp


# ---------------------------------------------------------------------------
# Pure-JAX reference (mirrors the PyTorch forward) for a correctness check
# ---------------------------------------------------------------------------
def _ref_forward(inputs, params, *, num_heads, head_size):
    def ln(x, g, b):
        mu = x.mean(-1, keepdims=True)
        var = ((x - mu) ** 2).mean(-1, keepdims=True)
        return (x - mu) / jnp.sqrt(var + 1e-5) * g + b

    B, T = inputs.shape
    x = jnp.take(params["tok_table"], inputs, axis=0) + params["pos_table"][:T][None]
    C = x.shape[-1]
    for p in params["blocks"]:
        h = ln(x, p["ln1g"][0], p["ln1b"][0])
        qkv = h @ p["wqkv"].astype(jnp.float32) + p["bqkv"][0]
        q, k, v = qkv[..., :C], qkv[..., C:2 * C], qkv[..., 2 * C:]

        def split_heads(t):
            return t.reshape(B, T, num_heads, head_size).transpose(0, 2, 1, 3)
        q, k, v = split_heads(q), split_heads(k), split_heads(v)
        wei = (q @ k.transpose(0, 1, 3, 2)) * head_size ** (-0.5)
        mask = jnp.tril(jnp.ones((T, T), bool))
        wei = jnp.where(mask, wei, -jnp.inf)
        wei = jax.nn.softmax(wei, axis=-1)
        attn = (wei @ v).transpose(0, 2, 1, 3).reshape(B, T, C)
        x = x + attn @ p["wproj"].astype(jnp.float32) + p["bproj"][0]
        h2 = ln(x, p["ln2g"][0], p["ln2b"][0])
        x = x + jnp.maximum(h2 @ p["w1"].astype(jnp.float32) + p["b1"][0],
                            0.0) @ p["w2"].astype(jnp.float32) + p["b2"][0]
    x = ln(x, params["lnfg"][0], params["lnfb"][0])
    return x @ params["wlm"].astype(jnp.float32) + params["blm"][0]


# ---------------------------------------------------------------------------
if __name__ == "__main__":
    vocab_size = 64
    context_length = 8
    n_embds = 32
    n_layers = 2
    num_heads = 4
    head_size = n_embds // num_heads
    B, T = 2, 8

    key = jax.random.PRNGKey(0)
    k_params, k_inp = jax.random.split(key)
    params = init_params(k_params, vocab_size, context_length, n_embds, n_layers)
    kparams = prepare_kernel_params(params, num_heads, head_size)
    inputs = jax.random.randint(k_inp, (B, T), 0, vocab_size, dtype=jnp.int32)

    fwd = jax.jit(functools.partial(gpt2_forward, n_layers=n_layers,
                                    num_heads=num_heads, head_size=head_size,
                                    vocab_size=vocab_size))
    logits = jax.block_until_ready(fwd(inputs, kparams))

    ref = _ref_forward(inputs, params, num_heads=num_heads, head_size=head_size)
    assert logits.shape == (B, T, vocab_size)
    # bf16 matmul operands (kernel) vs f32 matmuls on the same bf16 weights (ref)
    assert jnp.allclose(logits, ref, atol=1e-1, rtol=1e-1), "mismatch vs reference"

    # TODO(synk): cross-entropy loss path (targets != None) and generate()
    # (multinomial sampling loop) are host-level control flow, not kernelized.
    print("KERNEL_OK")
</pallas_src>

<mosaic_0001>
module attributes {stable_mosaic.version = 11 : i64} {
  func.func @gpt2_kernel(%arg0: i32, %arg1: memref<1x8x32xf32, #tpu.memory_space<vmem>>, %arg2: memref<2x1x32xf32, #tpu.memory_space<vmem>>, %arg3: memref<2x1x32xf32, #tpu.memory_space<vmem>>, %arg4: memref<2x4x32x24xbf16, #tpu.memory_space<vmem>>, %arg5: memref<2x4x1x24xf32, #tpu.memory_space<vmem>>, %arg6: memref<2x4x8x32xbf16, #tpu.memory_space<vmem>>, %arg7: memref<2x1x32xf32, #tpu.memory_space<vmem>>, %arg8: memref<2x1x32xf32, #tpu.memory_space<vmem>>, %arg9: memref<2x1x32xf32, #tpu.memory_space<vmem>>, %arg10: memref<2x32x128xbf16, #tpu.memory_space<vmem>>, %arg11: memref<2x1x128xf32, #tpu.memory_space<vmem>>, %arg12: memref<2x128x32xbf16, #tpu.memory_space<vmem>>, %arg13: memref<2x1x32xf32, #tpu.memory_space<vmem>>, %arg14: memref<1x32xf32, #tpu.memory_space<vmem>>, %arg15: memref<1x32xf32, #tpu.memory_space<vmem>>, %arg16: memref<32x128xbf16, #tpu.memory_space<vmem>>, %arg17: memref<1x128xf32, #tpu.memory_space<vmem>>, %arg18: memref<1x8x128xf32, #tpu.memory_space<vmem>>) attributes {dimension_semantics = [#tpu.dimension_semantics<parallel>], iteration_bounds = array<i64: 2>, scalar_prefetch = 0 : i64, scratch_operands = 0 : i64, tpu.core_type = #tpu.core_type<tc>, window_params = [{transform_indices = @transform_0, window_bounds = array<i64: 1, 8, 32>}, {pipeline_mode = #tpu.pipeline_mode<synchronous>, transform_indices = @transform_1, window_bounds = array<i64: 2, 1, 32>}, {pipeline_mode = #tpu.pipeline_mode<synchronous>, transform_indices = @transform_2, window_bounds = array<i64: 2, 1, 32>}, {pipeline_mode = #tpu.pipeline_mode<synchronous>, transform_indices = @transform_3, window_bounds = array<i64: 2, 4, 32, 24>}, {pipeline_mode = #tpu.pipeline_mode<synchronous>, transform_indices = @transform_4, window_bounds = array<i64: 2, 4, 1, 24>}, {pipeline_mode = #tpu.pipeline_mode<synchronous>, transform_indices = @transform_5, window_bounds = array<i64: 2, 4, 8, 32>}, {pipeline_mode = #tpu.pipeline_mode<synchronous>, transform_indices = @transform_6, window_bounds = array<i64: 2, 1, 32>}, {pipeline_mode = #tpu.pipeline_mode<synchronous>, transform_indices = @transform_7, window_bounds = array<i64: 2, 1, 32>}, {pipeline_mode = #tpu.pipeline_mode<synchronous>, transform_indices = @transform_8, window_bounds = array<i64: 2, 1, 32>}, {pipeline_mode = #tpu.pipeline_mode<synchronous>, transform_indices = @transform_9, window_bounds = array<i64: 2, 32, 128>}, {pipeline_mode = #tpu.pipeline_mode<synchronous>, transform_indices = @transform_10, window_bounds = array<i64: 2, 1, 128>}, {pipeline_mode = #tpu.pipeline_mode<synchronous>, transform_indices = @transform_11, window_bounds = array<i64: 2, 128, 32>}, {pipeline_mode = #tpu.pipeline_mode<synchronous>, transform_indices = @transform_12, window_bounds = array<i64: 2, 1, 32>}, {pipeline_mode = #tpu.pipeline_mode<synchronous>, transform_indices = @transform_13, window_bounds = array<i64: 1, 32>}, {pipeline_mode = #tpu.pipeline_mode<synchronous>, transform_indices = @transform_14, window_bounds = array<i64: 1, 32>}, {pipeline_mode = #tpu.pipeline_mode<synchronous>, transform_indices = @transform_15, window_bounds = array<i64: 32, 128>}, {pipeline_mode = #tpu.pipeline_mode<synchronous>, transform_indices = @transform_16, window_bounds = array<i64: 1, 128>}, {transform_indices = @transform_17, window_bounds = array<i64: 1, 8, 128>}]} {
    %c0 = arith.constant 0 : index
    %c0_0 = arith.constant 0 : index
    %c0_1 = arith.constant 0 : index
    %0 = vector.load %arg1[%c0, %c0_0, %c0_1] : memref<1x8x32xf32, #tpu.memory_space<vmem>>, vector<1x8x32xf32>
    %1 = vector.shape_cast %0 : vector<1x8x32xf32> to vector<8x32xf32>
    %2 = tpu.iota {dimensions = array<i32: 0>} : vector<8x8xi32>
    %3 = tpu.iota {dimensions = array<i32: 1>} : vector<8x8xi32>
    %4 = arith.cmpi sge, %2, %3 : vector<8x8xi32>
    %cst = arith.constant 0.000000e+00 : f32
    %cst_2 = arith.constant -1.000000e+30 : f32
    %5 = vector.broadcast %cst : f32 to vector<8x8xf32>
    %6 = vector.broadcast %cst_2 : f32 to vector<8x8xf32>
    %7 = arith.select %4, %5, %6 : vector<8x8xi1>, vector<8x8xf32>
    %8 = vector.shape_cast %7 : vector<8x8xf32> to vector<1x8x8xf32>
    %c0_3 = arith.constant 0 : index
    %c0_4 = arith.constant 0 : index
    %c0_5 = arith.constant 0 : index
    %9 = vector.load %arg2[%c0_3, %c0_4, %c0_5] : memref<2x1x32xf32, #tpu.memory_space<vmem>>, vector<1x1x32xf32>
    %10 = vector.shape_cast %9 : vector<1x1x32xf32> to vector<1x32xf32>
    %c0_6 = arith.constant 0 : index
    %c0_7 = arith.constant 0 : index
    %c0_8 = arith.constant 0 : index
    %11 = vector.load %arg3[%c0_6, %c0_7, %c0_8] : memref<2x1x32xf32, #tpu.memory_space<vmem>>, vector<1x1x32xf32>
    %12 = vector.shape_cast %11 : vector<1x1x32xf32> to vector<1x32xf32>
    %cst_9 = arith.constant dense<0.000000e+00> : vector<8xf32>
    %13 = vector.multi_reduction <add>, %1, %cst_9 [1] : vector<8x32xf32> to vector<8xf32>
    %14 = vector.shape_cast %13 : vector<8xf32> to vector<8x1xf32>
    %cst_10 = arith.constant 3.200000e+01 : f32
    %15 = vector.broadcast %cst_10 : f32 to vector<8x1xf32>
    %16 = arith.divf %14, %15 : vector<8x1xf32>
    %17 = vector.broadcast %16 : vector<8x1xf32> to vector<8x32xf32>
    %18 = arith.subf %1, %17 : vector<8x32xf32>
    %19 = arith.mulf %18, %18 : vector<8x32xf32>
    %cst_11 = arith.constant dense<0.000000e+00> : vector<8xf32>
    %20 = vector.multi_reduction <add>, %19, %cst_11 [1] : vector<8x32xf32> to vector<8xf32>
    %21 = vector.shape_cast %20 : vector<8xf32> to vector<8x1xf32>
    %cst_12 = arith.constant 3.200000e+01 : f32
    %22 = vector.broadcast %cst_12 : f32 to vector<8x1xf32>
    %23 = arith.divf %21, %22 : vector<8x1xf32>
    %24 = vector.broadcast %16 : vector<8x1xf32> to vector<8x32xf32>
    %25 = arith.subf %1, %24 : vector<8x32xf32>
    %cst_13 = arith.constant 9.99999974E-6 : f32
    %26 = vector.broadcast %cst_13 : f32 to vector<8x1xf32>
    %27 = arith.addf %23, %26 : vector<8x1xf32>
    %28 = math.rsqrt %27 : vector<8x1xf32>
    %29 = vector.broadcast %28 : vector<8x1xf32> to vector<8x32xf32>
    %30 = arith.mulf %25, %29 : vector<8x32xf32>
    %31 = vector.broadcast %10 : vector<1x32xf32> to vector<8x32xf32>
    %32 = arith.mulf %30, %31 : vector<8x32xf32>
    %33 = vector.broadcast %12 : vector<1x32xf32> to vector<8x32xf32>
    %34 = arith.addf %32, %33 : vector<8x32xf32>
    %35 = arith.truncf %34 : vector<8x32xf32> to vector<8x32xbf16>
    %36 = vector.shape_cast %35 : vector<8x32xbf16> to vector<1x8x32xbf16>
    %37 = vector.broadcast %36 : vector<1x8x32xbf16> to vector<4x8x32xbf16>
    %c0_14 = arith.constant 0 : index
    %c0_15 = arith.constant 0 : index
    %c0_16 = arith.constant 0 : index
    %c0_17 = arith.constant 0 : index
    %38 = vector.load %arg4[%c0_14, %c0_15, %c0_16, %c0_17] : memref<2x4x32x24xbf16, #tpu.memory_space<vmem>>, vector<1x4x32x24xbf16>
    %39 = vector.shape_cast %38 : vector<1x4x32x24xbf16> to vector<4x32x24xbf16>
    %cst_18 = arith.constant dense<0.000000e+00> : vector<4x8x24xf32>
    %40 = tpu.matmul %37, %39, %cst_18 {dimension_numbers = #tpu.dot_dimension_numbers<[2], [1], [1], [2], [0, 0, 0, 1, 1, 2], [0], [0]>} : vector<4x8x32xbf16>, vector<4x32x24xbf16>, vector<4x8x24xf32> -> vector<4x8x24xf32>
    %c0_19 = arith.constant 0 : index
    %c0_20 = arith.constant 0 : index
    %c0_21 = arith.constant 0 : index
    %c0_22 = arith.constant 0 : index
    %41 = vector.load %arg5[%c0_19, %c0_20, %c0_21, %c0_22] : memref<2x4x1x24xf32, #tpu.memory_space<vmem>>, vector<1x4x1x24xf32>
    %42 = vector.shape_cast %41 : vector<1x4x1x24xf32> to vector<4x1x24xf32>
    %43 = vector.broadcast %42 : vector<4x1x24xf32> to vector<4x8x24xf32>
    %44 = arith.addf %40, %43 : vector<4x8x24xf32>
    %45 = vector.extract_strided_slice %44 {offsets = [0, 0, 0], sizes = [4, 8, 8], strides = [1, 1, 1]} : vector<4x8x24xf32> to vector<4x8x8xf32>
    %46 = arith.truncf %45 : vector<4x8x8xf32> to vector<4x8x8xbf16>
    %47 = vector.extract_strided_slice %44 {offsets = [0, 0, 8], sizes = [4, 8, 8], strides = [1, 1, 1]} : vector<4x8x24xf32> to vector<4x8x8xf32>
    %48 = arith.truncf %47 : vector<4x8x8xf32> to vector<4x8x8xbf16>
    %49 = vector.extract_strided_slice %44 {offsets = [0, 0, 16], sizes = [4, 8, 8], strides = [1, 1, 1]} : vector<4x8x24xf32> to vector<4x8x8xf32>
    %50 = arith.truncf %49 : vector<4x8x8xf32> to vector<4x8x8xbf16>
    %cst_23 = arith.constant dense<0.000000e+00> : vector<4x8x8xf32>
    %51 = tpu.matmul %46, %48, %cst_23 {dimension_numbers = #tpu.dot_dimension_numbers<[2], [2], [1], [1], [0, 0, 0, 1, 1, 1], [0], [0]>} : vector<4x8x8xbf16>, vector<4x8x8xbf16>, vector<4x8x8xf32> -> vector<4x8x8xf32>
    %cst_24 = arith.constant 0.353553385 : f32
    %52 = vector.broadcast %cst_24 : f32 to vector<4x8x8xf32>
    %53 = arith.mulf %51, %52 : vector<4x8x8xf32>
    %54 = vector.broadcast %8 : vector<1x8x8xf32> to vector<4x8x8xf32>
    %55 = arith.addf %53, %54 : vector<4x8x8xf32>
    %cst_25 = arith.constant dense<0xFF800000> : vector<4x8xf32>
    %56 = vector.multi_reduction <maximumf>, %55, %cst_25 [2] : vector<4x8x8xf32> to vector<4x8xf32>
    %57 = vector.shape_cast %56 : vector<4x8xf32> to vector<4x8x1xf32>
    %58 = vector.broadcast %57 : vector<4x8x1xf32> to vector<4x8x8xf32>
    %59 = arith.subf %55, %58 : vector<4x8x8xf32>
    %60 = math.exp %59 : vector<4x8x8xf32>
    %cst_26 = arith.constant dense<0.000000e+00> : vector<4x8xf32>
    %61 = vector.multi_reduction <add>, %60, %cst_26 [2] : vector<4x8x8xf32> to vector<4x8xf32>
    %62 = vector.shape_cast %61 : vector<4x8xf32> to vector<4x8x1xf32>
    %63 = tpu.reciprocal %62 {approx = true} : vector<4x8x1xf32> -> vector<4x8x1xf32>
    %64 = vector.broadcast %63 : vector<4x8x1xf32> to vector<4x8x8xf32>
    %65 = arith.mulf %60, %64 : vector<4x8x8xf32>
    %66 = arith.truncf %65 : vector<4x8x8xf32> to vector<4x8x8xbf16>
    %cst_27 = arith.constant dense<0.000000e+00> : vector<4x8x8xf32>
    %67 = tpu.matmul %66, %50, %cst_27 {dimension_numbers = #tpu.dot_dimension_numbers<[2], [1], [1], [2], [0, 0, 0, 1, 1, 2], [0], [0]>} : vector<4x8x8xbf16>, vector<4x8x8xbf16>, vector<4x8x8xf32> -> vector<4x8x8xf32>
    %68 = arith.truncf %67 : vector<4x8x8xf32> to vector<4x8x8xbf16>
    %c0_28 = arith.constant 0 : index
    %c0_29 = arith.constant 0 : index
    %c0_30 = arith.constant 0 : index
    %c0_31 = arith.constant 0 : index
    %69 = vector.load %arg6[%c0_28, %c0_29, %c0_30, %c0_31] : memref<2x4x8x32xbf16, #tpu.memory_space<vmem>>, vector<1x4x8x32xbf16>
    %70 = vector.shape_cast %69 : vector<1x4x8x32xbf16> to vector<4x8x32xbf16>
    %cst_32 = arith.constant dense<0.000000e+00> : vector<4x8x32xf32>
    %71 = tpu.matmul %68, %70, %cst_32 {dimension_numbers = #tpu.dot_dimension_numbers<[2], [1], [1], [2], [0, 0, 0, 1, 1, 2], [0], [0]>} : vector<4x8x8xbf16>, vector<4x8x32xbf16>, vector<4x8x32xf32> -> vector<4x8x32xf32>
    %cst_33 = arith.constant dense<0.000000e+00> : vector<8x32xf32>
    %72 = vector.multi_reduction <add>, %71, %cst_33 [0] : vector<4x8x32xf32> to vector<8x32xf32>
    %73 = arith.addf %1, %72 : vector<8x32xf32>
    %c0_34 = arith.constant 0 : index
    %c0_35 = arith.constant 0 : index
    %c0_36 = arith.constant 0 : index
    %74 = vector.load %arg7[%c0_34, %c0_35, %c0_36] : memref<2x1x32xf32, #tpu.memory_space<vmem>>, vector<1x1x32xf32>
    %75 = vector.shape_cast %74 : vector<1x1x32xf32> to vector<1x32xf32>
    %76 = vector.broadcast %75 : vector<1x32xf32> to vector<8x32xf32>
    %77 = arith.addf %73, %76 : vector<8x32xf32>
    %c0_37 = arith.constant 0 : index
    %c0_38 = arith.constant 0 : index
    %c0_39 = arith.constant 0 : index
    %78 = vector.load %arg8[%c0_37, %c0_38, %c0_39] : memref<2x1x32xf32, #tpu.memory_space<vmem>>, vector<1x1x32xf32>
    %79 = vector.shape_cast %78 : vector<1x1x32xf32> to vector<1x32xf32>
    %c0_40 = arith.constant 0 : index
    %c0_41 = arith.constant 0 : index
    %c0_42 = arith.constant 0 : index
    %80 = vector.load %arg9[%c0_40, %c0_41, %c0_42] : memref<2x1x32xf32, #tpu.memory_space<vmem>>, vector<1x1x32xf32>
    %81 = vector.shape_cast %80 : vector<1x1x32xf32> to vector<1x32xf32>
    %cst_43 = arith.constant dense<0.000000e+00> : vector<8xf32>
    %82 = vector.multi_reduction <add>, %77, %cst_43 [1] : vector<8x32xf32> to vector<8xf32>
    %83 = vector.shape_cast %82 : vector<8xf32> to vector<8x1xf32>
    %cst_44 = arith.constant 3.200000e+01 : f32
    %84 = vector.broadcast %cst_44 : f32 to vector<8x1xf32>
    %85 = arith.divf %83, %84 : vector<8x1xf32>
    %86 = vector.broadcast %85 : vector<8x1xf32> to vector<8x32xf32>
    %87 = arith.subf %77, %86 : vector<8x32xf32>
    %88 = arith.mulf %87, %87 : vector<8x32xf32>
    %cst_45 = arith.constant dense<0.000000e+00> : vector<8xf32>
    %89 = vector.multi_reduction <add>, %88, %cst_45 [1] : vector<8x32xf32> to vector<8xf32>
    %90 = vector.shape_cast %89 : vector<8xf32> to vector<8x1xf32>
    %cst_46 = arith.constant 3.200000e+01 : f32
    %91 = vector.broadcast %cst_46 : f32 to vector<8x1xf32>
    %92 = arith.divf %90, %91 : vector<8x1xf32>
    %93 = vector.broadcast %85 : vector<8x1xf32> to vector<8x32xf32>
    %94 = arith.subf %77, %93 : vector<8x32xf32>
    %cst_47 = arith.constant 9.99999974E-6 : f32
    %95 = vector.broadcast %cst_47 : f32 to vector<8x1xf32>
    %96 = arith.addf %92, %95 : vector<8x1xf32>
    %97 = math.rsqrt %96 : vector<8x1xf32>
    %98 = vector.broadcast %97 : vector<8x1xf32> to vector<8x32xf32>
    %99 = arith.mulf %94, %98 : vector<8x32xf32>
    %100 = vector.broadcast %79 : vector<1x32xf32> to vector<8x32xf32>
    %101 = arith.mulf %99, %100 : vector<8x32xf32>
    %102 = vector.broadcast %81 : vector<1x32xf32> to vector<8x32xf32>
    %103 = arith.addf %101, %102 : vector<8x32xf32>
    %104 = arith.truncf %103 : vector<8x32xf32> to vector<8x32xbf16>
    %c0_48 = arith.constant 0 : index
    %c0_49 = arith.constant 0 : index
    %c0_50 = arith.constant 0 : index
    %105 = vector.load %arg10[%c0_48, %c0_49, %c0_50] : memref<2x32x128xbf16, #tpu.memory_space<vmem>>, vector<1x32x128xbf16>
    %106 = vector.shape_cast %105 : vector<1x32x128xbf16> to vector<32x128xbf16>
    %cst_51 = arith.constant dense<0.000000e+00> : vector<8x128xf32>
    %107 = tpu.matmul %104, %106, %cst_51 {dimension_numbers = #tpu.dot_dimension_numbers<[1], [0], [0], [1], [0, 0, 1, 1], [], []>} : vector<8x32xbf16>, vector<32x128xbf16>, vector<8x128xf32> -> vector<8x128xf32>
    %c0_52 = arith.constant 0 : index
    %c0_53 = arith.constant 0 : index
    %c0_54 = arith.constant 0 : index
    %108 = vector.load %arg11[%c0_52, %c0_53, %c0_54] : memref<2x1x128xf32, #tpu.memory_space<vmem>>, vector<1x1x128xf32>
    %109 = vector.shape_cast %108 : vector<1x1x128xf32> to vector<1x128xf32>
    %110 = vector.broadcast %109 : vector<1x128xf32> to vector<8x128xf32>
    %111 = arith.addf %107, %110 : vector<8x128xf32>
    %cst_55 = arith.constant 0.000000e+00 : f32
    %112 = vector.broadcast %cst_55 : f32 to vector<8x128xf32>
    %113 = arith.maximumf %111, %112 : vector<8x128xf32>
    %114 = arith.truncf %113 : vector<8x128xf32> to vector<8x128xbf16>
    %c0_56 = arith.constant 0 : index
    %c0_57 = arith.constant 0 : index
    %c0_58 = arith.constant 0 : index
    %115 = vector.load %arg12[%c0_56, %c0_57, %c0_58] : memref<2x128x32xbf16, #tpu.memory_space<vmem>>, vector<1x128x32xbf16>
    %116 = vector.shape_cast %115 : vector<1x128x32xbf16> to vector<128x32xbf16>
    %cst_59 = arith.constant dense<0.000000e+00> : vector<8x32xf32>
    %117 = tpu.matmul %114, %116, %cst_59 {dimension_numbers = #tpu.dot_dimension_numbers<[1], [0], [0], [1], [0, 0, 1, 1], [], []>} : vector<8x128xbf16>, vector<128x32xbf16>, vector<8x32xf32> -> vector<8x32xf32>
    %118 = arith.addf %77, %117 : vector<8x32xf32>
    %c0_60 = arith.constant 0 : index
    %c0_61 = arith.constant 0 : index
    %c0_62 = arith.constant 0 : index
    %119 = vector.load %arg13[%c0_60, %c0_61, %c0_62] : memref<2x1x32xf32, #tpu.memory_space<vmem>>, vector<1x1x32xf32>
    %120 = vector.shape_cast %119 : vector<1x1x32xf32> to vector<1x32xf32>
    %121 = vector.broadcast %120 : vector<1x32xf32> to vector<8x32xf32>
    %122 = arith.addf %118, %121 : vector<8x32xf32>
    %c1 = arith.constant 1 : index
    %c0_63 = arith.constant 0 : index
    %c0_64 = arith.constant 0 : index
    %123 = vector.load %arg2[%c1, %c0_63, %c0_64] : memref<2x1x32xf32, #tpu.memory_space<vmem>>, vector<1x1x32xf32>
    %124 = vector.shape_cast %123 : vector<1x1x32xf32> to vector<1x32xf32>
    %c1_65 = arith.constant 1 : index
    %c0_66 = arith.constant 0 : index
    %c0_67 = arith.constant 0 : index
    %125 = vector.load %arg3[%c1_65, %c0_66, %c0_67] : memref<2x1x32xf32, #tpu.memory_space<vmem>>, vector<1x1x32xf32>
    %126 = vector.shape_cast %125 : vector<1x1x32xf32> to vector<1x32xf32>
    %cst_68 = arith.constant dense<0.000000e+00> : vector<8xf32>
    %127 = vector.multi_reduction <add>, %122, %cst_68 [1] : vector<8x32xf32> to vector<8xf32>
    %128 = vector.shape_cast %127 : vector<8xf32> to vector<8x1xf32>
    %cst_69 = arith.constant 3.200000e+01 : f32
    %129 = vector.broadcast %cst_69 : f32 to vector<8x1xf32>
    %130 = arith.divf %128, %129 : vector<8x1xf32>
    %131 = vector.broadcast %130 : vector<8x1xf32> to vector<8x32xf32>
    %132 = arith.subf %122, %131 : vector<8x32xf32>
    %133 = arith.mulf %132, %132 : vector<8x32xf32>
    %cst_70 = arith.constant dense<0.000000e+00> : vector<8xf32>
    %134 = vector.multi_reduction <add>, %133, %cst_70 [1] : vector<8x32xf32> to vector<8xf32>
    %135 = vector.shape_cast %134 : vector<8xf32> to vector<8x1xf32>
    %cst_71 = arith.constant 3.200000e+01 : f32
    %136 = vector.broadcast %cst_71 : f32 to vector<8x1xf32>
    %137 = arith.divf %135, %136 : vector<8x1xf32>
    %138 = vector.broadcast %130 : vector<8x1xf32> to vector<8x32xf32>
    %139 = arith.subf %122, %138 : vector<8x32xf32>
    %cst_72 = arith.constant 9.99999974E-6 : f32
    %140 = vector.broadcast %cst_72 : f32 to vector<8x1xf32>
    %141 = arith.addf %137, %140 : vector<8x1xf32>
    %142 = math.rsqrt %141 : vector<8x1xf32>
    %143 = vector.broadcast %142 : vector<8x1xf32> to vector<8x32xf32>
    %144 = arith.mulf %139, %143 : vector<8x32xf32>
    %145 = vector.broadcast %124 : vector<1x32xf32> to vector<8x32xf32>
    %146 = arith.mulf %144, %145 : vector<8x32xf32>
    %147 = vector.broadcast %126 : vector<1x32xf32> to vector<8x32xf32>
    %148 = arith.addf %146, %147 : vector<8x32xf32>
    %149 = arith.truncf %148 : vector<8x32xf32> to vector<8x32xbf16>
    %150 = vector.shape_cast %149 : vector<8x32xbf16> to vector<1x8x32xbf16>
    %151 = vector.broadcast %150 : vector<1x8x32xbf16> to vector<4x8x32xbf16>
    %c1_73 = arith.constant 1 : index
    %c0_74 = arith.constant 0 : index
    %c0_75 = arith.constant 0 : index
    %c0_76 = arith.constant 0 : index
    %152 = vector.load %arg4[%c1_73, %c0_74, %c0_75, %c0_76] : memref<2x4x32x24xbf16, #tpu.memory_space<vmem>>, vector<1x4x32x24xbf16>
    %153 = vector.shape_cast %152 : vector<1x4x32x24xbf16> to vector<4x32x24xbf16>
    %cst_77 = arith.constant dense<0.000000e+00> : vector<4x8x24xf32>
    %154 = tpu.matmul %151, %153, %cst_77 {dimension_numbers = #tpu.dot_dimension_numbers<[2], [1], [1], [2], [0, 0, 0, 1, 1, 2], [0], [0]>} : vector<4x8x32xbf16>, vector<4x32x24xbf16>, vector<4x8x24xf32> -> vector<4x8x24xf32>
    %c1_78 = arith.constant 1 : index
    %c0_79 = arith.constant 0 : index
    %c0_80 = arith.constant 0 : index
    %c0_81 = arith.constant 0 : index
    %155 = vector.load %arg5[%c1_78, %c0_79, %c0_80, %c0_81] : memref<2x4x1x24xf32, #tpu.memory_space<vmem>>, vector<1x4x1x24xf32>
    %156 = vector.shape_cast %155 : vector<1x4x1x24xf32> to vector<4x1x24xf32>
    %157 = vector.broadcast %156 : vector<4x1x24xf32> to vector<4x8x24xf32>
    %158 = arith.addf %154, %157 : vector<4x8x24xf32>
    %159 = vector.extract_strided_slice %158 {offsets = [0, 0, 0], sizes = [4, 8, 8], strides = [1, 1, 1]} : vector<4x8x24xf32> to vector<4x8x8xf32>
    %160 = arith.truncf %159 : vector<4x8x8xf32> to vector<4x8x8xbf16>
    %161 = vector.extract_strided_slice %158 {offsets = [0, 0, 8], sizes = [4, 8, 8], strides = [1, 1, 1]} : vector<4x8x24xf32> to vector<4x8x8xf32>
    %162 = arith.truncf %161 : vector<4x8x8xf32> to vector<4x8x8xbf16>
    %163 = vector.extract_strided_slice %158 {offsets = [0, 0, 16], sizes = [4, 8, 8], strides = [1, 1, 1]} : vector<4x8x24xf32> to vector<4x8x8xf32>
    %164 = arith.truncf %163 : vector<4x8x8xf32> to vector<4x8x8xbf16>
    %cst_82 = arith.constant dense<0.000000e+00> : vector<4x8x8xf32>
    %165 = tpu.matmul %160, %162, %cst_82 {dimension_numbers = #tpu.dot_dimension_numbers<[2], [2], [1], [1], [0, 0, 0, 1, 1, 1], [0], [0]>} : vector<4x8x8xbf16>, vector<4x8x8xbf16>, vector<4x8x8xf32> -> vector<4x8x8xf32>
    %cst_83 = arith.constant 0.353553385 : f32
    %166 = vector.broadcast %cst_83 : f32 to vector<4x8x8xf32>
    %167 = arith.mulf %165, %166 : vector<4x8x8xf32>
    %168 = vector.broadcast %8 : vector<1x8x8xf32> to vector<4x8x8xf32>
    %169 = arith.addf %167, %168 : vector<4x8x8xf32>
    %cst_84 = arith.constant dense<0xFF800000> : vector<4x8xf32>
    %170 = vector.multi_reduction <maximumf>, %169, %cst_84 [2] : vector<4x8x8xf32> to vector<4x8xf32>
    %171 = vector.shape_cast %170 : vector<4x8xf32> to vector<4x8x1xf32>
    %172 = vector.broadcast %171 : vector<4x8x1xf32> to vector<4x8x8xf32>
    %173 = arith.subf %169, %172 : vector<4x8x8xf32>
    %174 = math.exp %173 : vector<4x8x8xf32>
    %cst_85 = arith.constant dense<0.000000e+00> : vector<4x8xf32>
    %175 = vector.multi_reduction <add>, %174, %cst_85 [2] : vector<4x8x8xf32> to vector<4x8xf32>
    %176 = vector.shape_cast %175 : vector<4x8xf32> to vector<4x8x1xf32>
    %177 = tpu.reciprocal %176 {approx = true} : vector<4x8x1xf32> -> vector<4x8x1xf32>
    %178 = vector.broadcast %177 : vector<4x8x1xf32> to vector<4x8x8xf32>
    %179 = arith.mulf %174, %178 : vector<4x8x8xf32>
    %180 = arith.truncf %179 : vector<4x8x8xf32> to vector<4x8x8xbf16>
    %cst_86 = arith.constant dense<0.000000e+00> : vector<4x8x8xf32>
    %181 = tpu.matmul %180, %164, %cst_86 {dimension_numbers = #tpu.dot_dimension_numbers<[2], [1], [1], [2], [0, 0, 0, 1, 1, 2], [0], [0]>} : vector<4x8x8xbf16>, vector<4x8x8xbf16>, vector<4x8x8xf32> -> vector<4x8x8xf32>
    %182 = arith.truncf %181 : vector<4x8x8xf32> to vector<4x8x8xbf16>
    %c1_87 = arith.constant 1 : index
    %c0_88 = arith.constant 0 : index
    %c0_89 = arith.constant 0 : index
    %c0_90 = arith.constant 0 : index
    %183 = vector.load %arg6[%c1_87, %c0_88, %c0_89, %c0_90] : memref<2x4x8x32xbf16, #tpu.memory_space<vmem>>, vector<1x4x8x32xbf16>
    %184 = vector.shape_cast %183 : vector<1x4x8x32xbf16> to vector<4x8x32xbf16>
    %cst_91 = arith.constant dense<0.000000e+00> : vector<4x8x32xf32>
    %185 = tpu.matmul %182, %184, %cst_91 {dimension_numbers = #tpu.dot_dimension_numbers<[2], [1], [1], [2], [0, 0, 0, 1, 1, 2], [0], [0]>} : vector<4x8x8xbf16>, vector<4x8x32xbf16>, vector<4x8x32xf32> -> vector<4x8x32xf32>
    %cst_92 = arith.constant dense<0.000000e+00> : vector<8x32xf32>
    %186 = vector.multi_reduction <add>, %185, %cst_92 [0] : vector<4x8x32xf32> to vector<8x32xf32>
    %187 = arith.addf %122, %186 : vector<8x32xf32>
    %c1_93 = arith.constant 1 : index
    %c0_94 = arith.constant 0 : index
    %c0_95 = arith.constant 0 : index
    %188 = vector.load %arg7[%c1_93, %c0_94, %c0_95] : memref<2x1x32xf32, #tpu.memory_space<vmem>>, vector<1x1x32xf32>
    %189 = vector.shape_cast %188 : vector<1x1x32xf32> to vector<1x32xf32>
    %190 = vector.broadcast %189 : vector<1x32xf32> to vector<8x32xf32>
    %191 = arith.addf %187, %190 : vector<8x32xf32>
    %c1_96 = arith.constant 1 : index
    %c0_97 = arith.constant 0 : index
    %c0_98 = arith.constant 0 : index
    %192 = vector.load %arg8[%c1_96, %c0_97, %c0_98] : memref<2x1x32xf32, #tpu.memory_space<vmem>>, vector<1x1x32xf32>
    %193 = vector.shape_cast %192 : vector<1x1x32xf32> to vector<1x32xf32>
    %c1_99 = arith.constant 1 : index
    %c0_100 = arith.constant 0 : index
    %c0_101 = arith.constant 0 : index
    %194 = vector.load %arg9[%c1_99, %c0_100, %c0_101] : memref<2x1x32xf32, #tpu.memory_space<vmem>>, vector<1x1x32xf32>
    %195 = vector.shape_cast %194 : vector<1x1x32xf32> to vector<1x32xf32>
    %cst_102 = arith.constant dense<0.000000e+00> : vector<8xf32>
    %196 = vector.multi_reduction <add>, %191, %cst_102 [1] : vector<8x32xf32> to vector<8xf32>
    %197 = vector.shape_cast %196 : vector<8xf32> to vector<8x1xf32>
    %cst_103 = arith.constant 3.200000e+01 : f32
    %198 = vector.broadcast %cst_103 : f32 to vector<8x1xf32>
    %199 = arith.divf %197, %198 : vector<8x1xf32>
    %200 = vector.broadcast %199 : vector<8x1xf32> to vector<8x32xf32>
    %201 = arith.subf %191, %200 : vector<8x32xf32>
    %202 = arith.mulf %201, %201 : vector<8x32xf32>
    %cst_104 = arith.constant dense<0.000000e+00> : vector<8xf32>
    %203 = vector.multi_reduction <add>, %202, %cst_104 [1] : vector<8x32xf32> to vector<8xf32>
    %204 = vector.shape_cast %203 : vector<8xf32> to vector<8x1xf32>
    %cst_105 = arith.constant 3.200000e+01 : f32
    %205 = vector.broadcast %cst_105 : f32 to vector<8x1xf32>
    %206 = arith.divf %204, %205 : vector<8x1xf32>
    %207 = vector.broadcast %199 : vector<8x1xf32> to vector<8x32xf32>
    %208 = arith.subf %191, %207 : vector<8x32xf32>
    %cst_106 = arith.constant 9.99999974E-6 : f32
    %209 = vector.broadcast %cst_106 : f32 to vector<8x1xf32>
    %210 = arith.addf %206, %209 : vector<8x1xf32>
    %211 = math.rsqrt %210 : vector<8x1xf32>
    %212 = vector.broadcast %211 : vector<8x1xf32> to vector<8x32xf32>
    %213 = arith.mulf %208, %212 : vector<8x32xf32>
    %214 = vector.broadcast %193 : vector<1x32xf32> to vector<8x32xf32>
    %215 = arith.mulf %213, %214 : vector<8x32xf32>
    %216 = vector.broadcast %195 : vector<1x32xf32> to vector<8x32xf32>
    %217 = arith.addf %215, %216 : vector<8x32xf32>
    %218 = arith.truncf %217 : vector<8x32xf32> to vector<8x32xbf16>
    %c1_107 = arith.constant 1 : index
    %c0_108 = arith.constant 0 : index
    %c0_109 = arith.constant 0 : index
    %219 = vector.load %arg10[%c1_107, %c0_108, %c0_109] : memref<2x32x128xbf16, #tpu.memory_space<vmem>>, vector<1x32x128xbf16>
    %220 = vector.shape_cast %219 : vector<1x32x128xbf16> to vector<32x128xbf16>
    %cst_110 = arith.constant dense<0.000000e+00> : vector<8x128xf32>
    %221 = tpu.matmul %218, %220, %cst_110 {dimension_numbers = #tpu.dot_dimension_numbers<[1], [0], [0], [1], [0, 0, 1, 1], [], []>} : vector<8x32xbf16>, vector<32x128xbf16>, vector<8x128xf32> -> vector<8x128xf32>
    %c1_111 = arith.constant 1 : index
    %c0_112 = arith.constant 0 : index
    %c0_113 = arith.constant 0 : index
    %222 = vector.load %arg11[%c1_111, %c0_112, %c0_113] : memref<2x1x128xf32, #tpu.memory_space<vmem>>, vector<1x1x128xf32>
    %223 = vector.shape_cast %222 : vector<1x1x128xf32> to vector<1x128xf32>
    %224 = vector.broadcast %223 : vector<1x128xf32> to vector<8x128xf32>
    %225 = arith.addf %221, %224 : vector<8x128xf32>
    %cst_114 = arith.constant 0.000000e+00 : f32
    %226 = vector.broadcast %cst_114 : f32 to vector<8x128xf32>
    %227 = arith.maximumf %225, %226 : vector<8x128xf32>
    %228 = arith.truncf %227 : vector<8x128xf32> to vector<8x128xbf16>
    %c1_115 = arith.constant 1 : index
    %c0_116 = arith.constant 0 : index
    %c0_117 = arith.constant 0 : index
    %229 = vector.load %arg12[%c1_115, %c0_116, %c0_117] : memref<2x128x32xbf16, #tpu.memory_space<vmem>>, vector<1x128x32xbf16>
    %230 = vector.shape_cast %229 : vector<1x128x32xbf16> to vector<128x32xbf16>
    %cst_118 = arith.constant dense<0.000000e+00> : vector<8x32xf32>
    %231 = tpu.matmul %228, %230, %cst_118 {dimension_numbers = #tpu.dot_dimension_numbers<[1], [0], [0], [1], [0, 0, 1, 1], [], []>} : vector<8x128xbf16>, vector<128x32xbf16>, vector<8x32xf32> -> vector<8x32xf32>
    %232 = arith.addf %191, %231 : vector<8x32xf32>
    %c1_119 = arith.constant 1 : index
    %c0_120 = arith.constant 0 : index
    %c0_121 = arith.constant 0 : index
    %233 = vector.load %arg13[%c1_119, %c0_120, %c0_121] : memref<2x1x32xf32, #tpu.memory_space<vmem>>, vector<1x1x32xf32>
    %234 = vector.shape_cast %233 : vector<1x1x32xf32> to vector<1x32xf32>
    %235 = vector.broadcast %234 : vector<1x32xf32> to vector<8x32xf32>
    %236 = arith.addf %232, %235 : vector<8x32xf32>
    %c0_122 = arith.constant 0 : index
    %c0_123 = arith.constant 0 : index
    %237 = vector.load %arg14[%c0_122, %c0_123] : memref<1x32xf32, #tpu.memory_space<vmem>>, vector<1x32xf32>
    %c0_124 = arith.constant 0 : index
    %c0_125 = arith.constant 0 : index
    %238 = vector.load %arg15[%c0_124, %c0_125] : memref<1x32xf32, #tpu.memory_space<vmem>>, vector<1x32xf32>
    %cst_126 = arith.constant dense<0.000000e+00> : vector<8xf32>
    %239 = vector.multi_reduction <add>, %236, %cst_126 [1] : vector<8x32xf32> to vector<8xf32>
    %240 = vector.shape_cast %239 : vector<8xf32> to vector<8x1xf32>
    %cst_127 = arith.constant 3.200000e+01 : f32
    %241 = vector.broadcast %cst_127 : f32 to vector<8x1xf32>
    %242 = arith.divf %240, %241 : vector<8x1xf32>
    %243 = vector.broadcast %242 : vector<8x1xf32> to vector<8x32xf32>
    %244 = arith.subf %236, %243 : vector<8x32xf32>
    %245 = arith.mulf %244, %244 : vector<8x32xf32>
    %cst_128 = arith.constant dense<0.000000e+00> : vector<8xf32>
    %246 = vector.multi_reduction <add>, %245, %cst_128 [1] : vector<8x32xf32> to vector<8xf32>
    %247 = vector.shape_cast %246 : vector<8xf32> to vector<8x1xf32>
    %cst_129 = arith.constant 3.200000e+01 : f32
    %248 = vector.broadcast %cst_129 : f32 to vector<8x1xf32>
    %249 = arith.divf %247, %248 : vector<8x1xf32>
    %250 = vector.broadcast %242 : vector<8x1xf32> to vector<8x32xf32>
    %251 = arith.subf %236, %250 : vector<8x32xf32>
    %cst_130 = arith.constant 9.99999974E-6 : f32
    %252 = vector.broadcast %cst_130 : f32 to vector<8x1xf32>
    %253 = arith.addf %249, %252 : vector<8x1xf32>
    %254 = math.rsqrt %253 : vector<8x1xf32>
    %255 = vector.broadcast %254 : vector<8x1xf32> to vector<8x32xf32>
    %256 = arith.mulf %251, %255 : vector<8x32xf32>
    %257 = vector.broadcast %237 : vector<1x32xf32> to vector<8x32xf32>
    %258 = arith.mulf %256, %257 : vector<8x32xf32>
    %259 = vector.broadcast %238 : vector<1x32xf32> to vector<8x32xf32>
    %260 = arith.addf %258, %259 : vector<8x32xf32>
    %261 = arith.truncf %260 : vector<8x32xf32> to vector<8x32xbf16>
    %c0_131 = arith.constant 0 : index
    %c0_132 = arith.constant 0 : index
    %262 = vector.load %arg16[%c0_131, %c0_132] : memref<32x128xbf16, #tpu.memory_space<vmem>>, vector<32x128xbf16>
    %cst_133 = arith.constant dense<0.000000e+00> : vector<8x128xf32>
    %263 = tpu.matmul %261, %262, %cst_133 {dimension_numbers = #tpu.dot_dimension_numbers<[1], [0], [0], [1], [0, 0, 1, 1], [], []>} : vector<8x32xbf16>, vector<32x128xbf16>, vector<8x128xf32> -> vector<8x128xf32>
    %c0_134 = arith.constant 0 : index
    %c0_135 = arith.constant 0 : index
    %264 = vector.load %arg17[%c0_134, %c0_135] : memref<1x128xf32, #tpu.memory_space<vmem>>, vector<1x128xf32>
    %265 = vector.broadcast %264 : vector<1x128xf32> to vector<8x128xf32>
    %266 = arith.addf %263, %265 : vector<8x128xf32>
    %c0_136 = arith.constant 0 : index
    %c0_137 = arith.constant 0 : index
    %c0_138 = arith.constant 0 : index
    %267 = vector.load %arg18[%c0_136, %c0_137, %c0_138] : memref<1x8x128xf32, #tpu.memory_space<vmem>>, vector<1x8x128xf32>
    %268 = vector.shape_cast %267 : vector<1x8x128xf32> to vector<8x128xf32>
    %269 = vector.shape_cast %266 : vector<8x128xf32> to vector<1x8x128xf32>
    tpu.vector_store %arg18[%c0_136, %c0_137, %c0_138], %269 {strides = array<i32>} : memref<1x8x128xf32, #tpu.memory_space<vmem>>, vector<1x8x128xf32>,
    return
  }
  func.func @transform_0(%arg0: i32) -> (i32, i32, i32) {
    %c0_i32 = arith.constant 0 : i32
    %c0_i32_0 = arith.constant 0 : i32
    %c0_i32_1 = arith.constant 0 : i32
    return %arg0, %c0_i32, %c0_i32_0 : i32, i32, i32
  }
  func.func @transform_1(%arg0: i32) -> (i32, i32, i32) {
    %c0_i32 = arith.constant 0 : i32
    %c0_i32_0 = arith.constant 0 : i32
    %c0_i32_1 = arith.constant 0 : i32
    %c0_i32_2 = arith.constant 0 : i32
    return %c0_i32, %c0_i32_0, %c0_i32_1 : i32, i32, i32
  }
  func.func @transform_2(%arg0: i32) -> (i32, i32, i32) {
    %c0_i32 = arith.constant 0 : i32
    %c0_i32_0 = arith.constant 0 : i32
    %c0_i32_1 = arith.constant 0 : i32
    %c0_i32_2 = arith.constant 0 : i32
    return %c0_i32, %c0_i32_0, %c0_i32_1 : i32, i32, i32
  }
  func.func @transform_3(%arg0: i32) -> (i32, i32, i32, i32) {
    %c0_i32 = arith.constant 0 : i32
    %c0_i32_0 = arith.constant 0 : i32
    %c0_i32_1 = arith.constant 0 : i32
    %c0_i32_2 = arith.constant 0 : i32
    %c0_i32_3 = arith.constant 0 : i32
    return %c0_i32, %c0_i32_0, %c0_i32_1, %c0_i32_2 : i32, i32, i32, i32
  }
  func.func @transform_4(%arg0: i32) -> (i32, i32, i32, i32) {
    %c0_i32 = arith.constant 0 : i32
    %c0_i32_0 = arith.constant 0 : i32
    %c0_i32_1 = arith.constant 0 : i32
    %c0_i32_2 = arith.constant 0 : i32
    %c0_i32_3 = arith.constant 0 : i32
    return %c0_i32, %c0_i32_0, %c0_i32_1, %c0_i32_2 : i32, i32, i32, i32
  }
  func.func @transform_5(%arg0: i32) -> (i32, i32, i32, i32) {
    %c0_i32 = arith.constant 0 : i32
    %c0_i32_0 = arith.constant 0 : i32
    %c0_i32_1 = arith.constant 0 : i32
    %c0_i32_2 = arith.constant 0 : i32
    %c0_i32_3 = arith.constant 0 : i32
    return %c0_i32, %c0_i32_0, %c0_i32_1, %c0_i32_2 : i32, i32, i32, i32
  }
  func.func @transform_6(%arg0: i32) -> (i32, i32, i32) {
    %c0_i32 = arith.constant 0 : i32
    %c0_i32_0 = arith.constant 0 : i32
    %c0_i32_1 = arith.constant 0 : i32
    %c0_i32_2 = arith.constant 0 : i32
    return %c0_i32, %c0_i32_0, %c0_i32_1 : i32, i32, i32
  }
  func.func @transform_7(%arg0: i32) -> (i32, i32, i32) {
    %c0_i32 = arith.constant 0 : i32
    %c0_i32_0 = arith.constant 0 : i32
    %c0_i32_1 = arith.constant 0 : i32
    %c0_i32_2 = arith.constant 0 : i32
    return %c0_i32, %c0_i32_0, %c0_i32_1 : i32, i32, i32
  }
  func.func @transform_8(%arg0: i32) -> (i32, i32, i32) {
    %c0_i32 = arith.constant 0 : i32
    %c0_i32_0 = arith.constant 0 : i32
    %c0_i32_1 = arith.constant 0 : i32
    %c0_i32_2 = arith.constant 0 : i32
    return %c0_i32, %c0_i32_0, %c0_i32_1 : i32, i32, i32
  }
  func.func @transform_9(%arg0: i32) -> (i32, i32, i32) {
    %c0_i32 = arith.constant 0 : i32
    %c0_i32_0 = arith.constant 0 : i32
    %c0_i32_1 = arith.constant 0 : i32
    %c0_i32_2 = arith.constant 0 : i32
    return %c0_i32, %c0_i32_0, %c0_i32_1 : i32, i32, i32
  }
  func.func @transform_10(%arg0: i32) -> (i32, i32, i32) {
    %c0_i32 = arith.constant 0 : i32
    %c0_i32_0 = arith.constant 0 : i32
    %c0_i32_1 = arith.constant 0 : i32
    %c0_i32_2 = arith.constant 0 : i32
    return %c0_i32, %c0_i32_0, %c0_i32_1 : i32, i32, i32
  }
  func.func @transform_11(%arg0: i32) -> (i32, i32, i32) {
    %c0_i32 = arith.constant 0 : i32
    %c0_i32_0 = arith.constant 0 : i32
    %c0_i32_1 = arith.constant 0 : i32
    %c0_i32_2 = arith.constant 0 : i32
    return %c0_i32, %c0_i32_0, %c0_i32_1 : i32, i32, i32
  }
  func.func @transform_12(%arg0: i32) -> (i32, i32, i32) {
    %c0_i32 = arith.constant 0 : i32
    %c0_i32_0 = arith.constant 0 : i32
    %c0_i32_1 = arith.constant 0 : i32
    %c0_i32_2 = arith.constant 0 : i32
    return %c0_i32, %c0_i32_0, %c0_i32_1 : i32, i32, i32
  }
  func.func @transform_13(%arg0: i32) -> (i32, i32) {
    %c0_i32 = arith.constant 0 : i32
    %c0_i32_0 = arith.constant 0 : i32
    %c0_i32_1 = arith.constant 0 : i32
    return %c0_i32, %c0_i32_0 : i32, i32
  }
  func.func @transform_14(%arg0: i32) -> (i32, i32) {
    %c0_i32 = arith.constant 0 : i32
    %c0_i32_0 = arith.constant 0 : i32
    %c0_i32_1 = arith.constant 0 : i32
    return %c0_i32, %c0_i32_0 : i32, i32
  }
  func.func @transform_15(%arg0: i32) -> (i32, i32) {
    %c0_i32 = arith.constant 0 : i32
    %c0_i32_0 = arith.constant 0 : i32
    %c0_i32_1 = arith.constant 0 : i32
    return %c0_i32, %c0_i32_0 : i32, i32
  }
  func.func @transform_16(%arg0: i32) -> (i32, i32) {
    %c0_i32 = arith.constant 0 : i32
    %c0_i32_0 = arith.constant 0 : i32
    %c0_i32_1 = arith.constant 0 : i32
    return %c0_i32, %c0_i32_0 : i32, i32
  }
  func.func @transform_17(%arg0: i32) -> (i32, i32, i32) {
    %c0_i32 = arith.constant 0 : i32
    %c0_i32_0 = arith.constant 0 : i32
    %c0_i32_1 = arith.constant 0 : i32
    return %arg0, %c0_i32, %c0_i32_0 : i32, i32, i32
  }
}

</mosaic_0001>

<bundles_post_ra>
// kernel: gpt2_forward.1
= control target key start
LH: loop header
LB: loop body
LE: loop exit
PB: predicated region body
PF: predicated region fallthrough
CT: control target
= control target key end

     0   :  { %s4479_s0 = inlined_call_operand.vmem [shape: f32[2,8,32], index: 0, kind: input, shape index: {}]   ;;  %s4480_s1 = inlined_call_operand.vmem [shape: f32[2,1,32], index: 1, kind: input, shape index: {}]   ;;  %s4481_s2 = inlined_call_operand.vmem [shape: f32[2,1,32], index: 2, kind: input, shape index: {}]   ;;  %s4482_s3 = inlined_call_operand.vmem [shape: bf16[2,4,32,24], index: 3, kind: input, shape index: {}]   ;;  %s4483_s4 = inlined_call_operand.vmem [shape: f32[2,4,1,24], index: 4, kind: input, shape index: {}]   ;;  %s4484_s5 = inlined_call_operand.vmem [shape: bf16[2,4,8,32], index: 5, kind: input, shape index: {}]   ;;  %s4485_s6 = inlined_call_operand.vmem [shape: f32[2,1,32], index: 6, kind: input, shape index: {}]   ;;  %s4486_s7 = inlined_call_operand.vmem [shape: f32[2,1,32], index: 7, kind: input, shape index: {}]   ;;  %s4487_s8 = inlined_call_operand.vmem [shape: f32[2,1,32], index: 8, kind: input, shape index: {}]   ;;  %s4488_s9 = inlined_call_operand.vmem [shape: bf16[2,32,128], index: 9, kind: input, shape index: {}]   ;;  %s4489_s10 = inlined_call_operand.vmem [shape: f32[2,1,128], index: 10, kind: input, shape index: {}]   ;;  %s4490_s11 = inlined_call_operand.vmem [shape: bf16[2,128,32], index: 11, kind: input, shape index: {}]   ;;  %s4491_s12 = inlined_call_operand.vmem [shape: f32[2,1,32], index: 12, kind: input, shape index: {}]   ;;  %s4492_s13 = inlined_call_operand.vmem [shape: f32[1,32], index: 13, kind: input, shape index: {}]   ;;  %s4493_s14 = inlined_call_operand.vmem [shape: f32[1,32], index: 14, kind: input, shape index: {}]   ;;  %s4494_s15 = inlined_call_operand.vmem [shape: bf16[32,128], index: 15, kind: input, shape index: {}]   ;;  %s4495_s16 = inlined_call_operand.vmem [shape: f32[1,128], index: 16, kind: input, shape index: {}]   ;;  %s4496_s17 = inlined_call_operand.hbm [shape: f32[2,8,128], index: 17, kind: output, shape index: {}]  }
   0x1   :  { %4505 = sst [smem:[#allocation8_spill]] %s4479_s0 }
   0x2   :  { %4506 = sst [smem:[#allocation9_spill]] %s4480_s1 }
   0x3   :  { %4507 = sst [smem:[#allocation10_spill]] %s4481_s2 }
   0x4   :  { %4508 = sst [smem:[#allocation11_spill]] %s4482_s3 }
   0x5   :  { %22 = vsyncpa [#allocation3], 0 }
   0x6   :  { %24 = vsyncpa [#allocation3 + $0x1], 0  ;;  %s3856_s24 = smov 0   ;;  %s3858_s25 = smov 0  }
   0x7   :  { %s3860_s26 = smov 0   ;;  %s3862_s27 = smov 0  }
   0x8 LB: > { %4509 = sst [smem:[#allocation5_spill]] %s3754_s26  ;;  %s3877_s28 = sadd.s32 4294967295, %s3758_s27   ;;  %s3758_s27 = sphi %s3862_s27, %s4520_s27   ;;  %s3754_s26 = sphi %s3860_s26, %s4522_s26   ;;  %s3750_s25 = sphi %s3858_s25, %s4524_s25   ;;  %s3746_s24 = sphi %s3856_s24, %s4523_s24  }
   0x9   : > { %s3042_s29 = sadd.s32 4294967294, %s3758_s27   ;;  %s3881_s0 = sadd.s32 1, %s3758_s27  }
   0xa   : > { %4510 = sst [smem:[#allocation6_spill]] %s3881_s0  ;;  %s399_s30 = sadd.s32 1, %s3754_s26 }
   0xb   : > { %s396_s18 = ssub.s32 %s3758_s27, %s3881_s0  ;;  %p409_p0 = scmp.ne.s32.totalorder %s3754_s26, %s3750_s25 }
   0xc   : > { %p397_p1 = scmp.eq.s32.totalorder %s396_s18, 0  ;;  %p410_p2 = scmp.eq.s32.totalorder %s3877_s28, 1 }
   0xd   : > { %p415_p3 = scmp.ne.s32.totalorder %s3750_s25, %s3746_s24  ;;  %p416_p4 = scmp.eq.s32.totalorder %s3042_s29, 1 }
   0xe   : > { %s3892_s19 = scalar_select %p397_p1, %s3754_s26, %s399_s30  }
   0xf   : > { %p3894_p5 = por %p410_p2, %p409_p0  ;;  %p3898_p6 = por %p416_p4, %p415_p3 }
  0x10   : > { %4511 = sst [smem:[#allocation7_spill]] %s3892_s19  ;;  %p3045_p7 = scmp.ge.s32.totalorder %s3758_s27, 1 }
  0x11   : > { %p489_p8 = scmp.lt.s32.totalorder %s3758_s27, 3 }
  0x13   : > { %p490_p9 = pnand %p3045_p7, %p489_p8 }
  0x14   : > { %p540_p10 = scmp.lt.s32.totalorder (!%p490_p9), %s3877_s28, 1  ;;  %vm554_vm0 = vcmask (!%p490_p9), 261120   ;;  %s4514_s30 = sld [smem:[#allocation8_spill]] (!%p490_p9)  ;;  %v3760_v9 = vmov (!%p490_p9), 0.0   ;;  %vm3761_vm1 = vmmov (!%p490_p9), 0   ;;  %vm846_vm2 = vcmask (!%p490_p9), 64512  }
  0x15   : > { %493 = sbr.rel (%p490_p9) target bundleno = 5353 (0x14e9), region = 88  ;;  %s4515_s3 = sld [smem:[#allocation11_spill]] (!%p490_p9)  ;;  %3300 = vmatprep.subr.bf16.mxu1 (!%p490_p9), %v3760_v9  ;;  %3316 = vmatprep.subr.bf16.mxu0 (!%p490_p9), %v3760_v9  ;;  %v3050_v26 = vld [vmem:[%s4483_s4] ss:$0 sm:$0xff] (!%p490_p9)  ;;  %v3052_v27 = vld [vmem:[%s4483_s4 + $0x2] ss:$0 sm:$0xff] (!%p490_p9)  ;;  %v546_v62 = vlaneseq (!%p490_p9) }
  0x16   : > { %3304 = vmatprep.mubr.msk.bf16.mxu1 (!%p490_p9), %vm3761_vm1, %v3760_v9  ;;  %3320 = vmatprep.mubr.msk.bf16.mxu0 (!%p490_p9), %vm3761_vm1, %v3760_v9  ;;  %s4517_s2 = sld [smem:[#allocation10_spill]] (!%p490_p9)  ;;  %s4501_s23 = smov (!%p490_p9), 120   ;;  %v3051_v40 = vld [vmem:[%s4483_s4 + $0x1] ss:$0 sm:$0xff] (!%p490_p9)  ;;  %v3053_v47 = vld [vmem:[%s4483_s4 + $0x3] ss:$0 sm:$0xff] (!%p490_p9) }
  0x17   : > { %v547_v63 = vshrl.u32 (!%p490_p9), %v546_v62, 7  ;;  %s4499_s26 = smov (!%p490_p9), 112   ;;  %vm1101_vm4 = vcmask (!%p490_p9), 1043456   ;;  %s4518_s19 = smov (!%p490_p9), 120  }
  0x1b   : > { %v3616_v7 = vld [vmem:[%s4515_s3] sm:$0xff] (!%p490_p9)   ;;  %v3618_v10 = vld [vmem:[%s4515_s3 + $0x8] sm:$0xff] (!%p490_p9)   ;;  %v3620_v21 = vld [vmem:[%s4515_s3 + $0x10] sm:$0xff] (!%p490_p9)  }
  0x1c   : > { %s541_s21 = scalar_select %p540_p10, %s3877_s28, 1  ;;  %v3617_v8 = vld [vmem:[%s4515_s3 + $0x20] sm:$0xff]   ;;  %3301 = vmatpush3.bf16.msra.mxu1 %v3616_v7  ;;  %v3619_v11 = vld [vmem:[%s4515_s3 + $0x28] sm:$0xff]   ;;  %v3621_v23 = vld [vmem:[%s4515_s3 + $0x18] sm:$0xff]  }
  0x1d   : > { %3317 = vmatpush3.bf16.msra.mxu0 %v3617_v8  ;;  %3302 = vmatprep.subr.bf16.mxu1 %v3760_v9  ;;  %v3049_v18 = vld [vmem:[%s4517_s2] ss:$0 sm:$0xff]  ;;  %v3622_v24 = vld [vmem:[%s4515_s3 + $0x30] sm:$0xff]   ;;  %v3623_v25 = vld [vmem:[%s4515_s3 + $0x38] sm:$0xff]  }
  0x1e   : > { %s3047_s22 = sshll.u32 %s541_s21, 3  ;;  %3318 = vmatprep.subr.bf16.mxu0 %v3760_v9  ;;  %s4516_s21 = sld [smem:[#allocation9_spill]] }
  0x1f   : > { %s543_s18 = scalar_lea.vmem %s4514_s30, %s3047_s22  ;;  %s537_s30 = sand.u32 1, %s3750_s25  }
  0x20   : > { %v3909_v0 = vld [vmem:[%s543_s18] sm:$0xff]  ;;  %3303 = vmatpush3.bf16.msra.mxu1 %v3618_v10  ;;  %s4519_s18 = smov 112  }
  0x21   : > { %v555_v1 = vsel %vm554_vm0, %v3909_v0, 0.0  ;;  %3319 = vmatpush3.bf16.msra.mxu0 %v3619_v11  ;;  %3308 = vmatprep.subr.bf16.mxu1 %v3760_v9 }
  0x22   : > { %556 = vadd.xlane.f32.xlu0 %v555_v1  ;;  %3332 = vmatprep.subr.bf16.mxu0 %v3760_v9  ;;  %v549_v1 = vand.u32 127, %v546_v62 }
  0x24   : > { %v3048_v16 = vld [vmem:[%s4516_s21] ss:$0 sm:$0xff]  ;;  %vm550_vm3 = vcmp.ge.s32.totalorder %v547_v63, %v549_v1 }
  0xaf   : > { %v557_v2 = vpop.xlane.xlu0 %556 }
  0xb0   : > { %v559_v3 = vmul.f32 0.03125, %v557_v2 }
  0xb2   : > { %v560_v4 = vsub.f32 %v3909_v0, %v559_v3  ;;  %v3763_v3 = vmov -1e+30  }
  0xb4   : > { %v561_v5 = vmul.f32 %v560_v4, %v560_v4 }
  0xb6   : > { %v562_v6 = vsel %vm554_vm0, %v561_v5, 0.0 }
  0xb7   : > { %563 = vadd.xlane.f32.xlu0 %v562_v6 }
 0x144   : > { %v564_v12 = vpop.xlane.xlu0 %563 }
 0x145   : > { %v565_v13 = vmul.f32 0.03125, %v564_v12 }
 0x147   : > { %v566_v14 = vadd.f32 1e-05, %v565_v13 }
 0x149   : > { %3654 = vrsqrt.f32 %v566_v14 }
 0x153   : > { %v3655_v15 = vpop.eup %3654 }
 0x154   : > { %v568_v17 = vmul.f32 %v3655_v15, %v560_v4  ;;  %v4023_v4 = vsel %vm550_vm3, 0.0, %v3763_v3 }
 0x156   : > { %v575_v19 = vmul.f32 %v3048_v16, %v568_v17 }
 0x158   : > { %v582_v20 = vadd.f32 %v3049_v18, %v575_v19 }
 0x15a   : > { %v583_v22 = vpack.c.bf16 %v582_v20, %v582_v20 }
 0x15c   : > { %3305 = vmatmul.mubr.msk.bf16.vlgmr.msra.gmra.mrb[0].mxu1 %vm554_vm0, %v583_v22  ;;  %3321 = vmatmul.mubr.msk.bf16.vlgmr.msra.gmra.mrb[0].mxu0 %vm554_vm0, %v583_v22 }
 0x15d   : > { %3309 = vmatpush3.bf16.msra.mxu1 %v3620_v21  ;;  %3312 = vmatprep.mubr.msk.bf16.mxu1 %vm3761_vm1, %v3760_v9 }
 0x15e   : > { %3310 = vmatprep.subr.bf16.mxu1 %v3760_v9  ;;  %3334 = vmatprep.mubr.msk.bf16.mxu0 %vm3761_vm1, %v3760_v9 }
 0x161   : > { %3311 = vmatpush3.bf16.msra.mxu1 %v3621_v23 }
 0x162   : > { %3324 = vmatprep.subr.bf16.mxu1 %v3760_v9 }
 0x164   : > { %3313 = vmatmul.mubr.msk.bf16.vlgmr.msra.gmra.mrb[4].mxu1 %vm554_vm0, %v583_v22 }
 0x165   : > { %3325 = vmatpush3.bf16.msra.mxu1 %v3622_v24  ;;  %3328 = vmatprep.mubr.msk.bf16.mxu1 %vm3761_vm1, %v3760_v9 }
 0x166   : > { %3326 = vmatprep.subr.bf16.mxu1 %v3760_v9 }
 0x169   : > { %3327 = vmatpush3.bf16.msra.mxu1 %v3623_v25 }
 0x16a   : > { %3338 = vmatprep.subr.bf16.mxu1 %v3760_v9 }
 0x16c   : > { %3329 = vmatmul.mubr.msk.bf16.vlgmr.msra.gmra.mrb[8].mxu1 %vm554_vm0, %v583_v22 }
 0x16d   : > { %3340 = vmatprep.mubr.msk.bf16.mxu1 %vm3761_vm1, %v3760_v9 }
 0x22f   : > { %v677_v28 = vpop.f32.mrb[0].mxu1  ;;  %v781_v29 = vpop.f32.mrb[0].mxu0 }
 0x230   : > { %v678_v30 = vadd.f32 %v3050_v26, %v677_v28  ;;  %v782_v31 = vadd.f32 %v3052_v27, %v781_v29  ;;  %v3306_v32 = vpop.f32.mrb[1].mxu1  ;;  %v3322_v33 = vpop.f32.mrb[1].mxu0 }
 0x231   : > { %v680_v34 = vpop.f32.mrb[2].mxu1  ;;  %v784_v35 = vpop.f32.mrb[2].mxu0 }
 0x232   : > { %v3977_v36 = vpack.c.bf16 %v678_v30, %v678_v30  ;;  %v3979_v37 = vpack.c.bf16 %v782_v31, %v782_v31  ;;  %v3307_v38 = vpop.f32.mrb[3].mxu1  ;;  %v3323_v39 = vpop.f32.mrb[3].mxu0 }
 0x234   : > { %943 = vrot.lane.b32.xlu0 %v3979_v37, %s4501_s23  ;;  %844 = vrot.lane.b32.xlu1 %v3977_v36, %s4501_s23 }
 0x237   : > { %v729_v41 = vpop.f32.mrb[4].mxu1 }
 0x238   : > { %v730_v42 = vadd.f32 %v3051_v40, %v729_v41  ;;  %v3314_v43 = vpop.f32.mrb[5].mxu1 }
 0x239   : > { %v732_v44 = vpop.f32.mrb[6].mxu1 }
 0x23a   : > { %v3988_v45 = vpack.c.bf16 %v730_v42, %v730_v42  ;;  %v3315_v46 = vpop.f32.mrb[7].mxu1 }
 0x23c   : > { %894 = vrot.lane.b32.xlu1 %v3988_v45, %s4501_s23 }
 0x23f   : > { %v833_v48 = vpop.f32.mrb[8].mxu1 }
 0x240   : > { %v834_v49 = vadd.f32 %v3053_v47, %v833_v48  ;;  %v3330_v50 = vpop.f32.mrb[9].mxu1 }
 0x241   : > { %v836_v51 = vpop.f32.mrb[10].mxu1 }
 0x242   : > { %v3995_v52 = vpack.c.bf16 %v834_v49, %v834_v49  ;;  %v3331_v53 = vpop.f32.mrb[11].mxu1 }
 0x244   : > { %992 = vrot.lane.b32.xlu1 %v3995_v52, %s4501_s23 }
 0x2a6   : > { %v845_v54 = vpop.permute.xlu1 %844  ;;  %v944_v56 = vpop.permute.xlu0 %943 }
 0x2a7   : > { %v851_v55 = vsel %vm846_vm2, %v845_v54, 0  ;;  %v949_v58 = vsel %vm846_vm2, %v944_v56, 0 }
 0x2a8   : > { %3333 = vmatpush3.bf16.xpose.msra.mxu0 %v851_v55 }
 0x2a9   : > { %3344 = vmatprep.subr.bf16.mxu0 %v3760_v9 }
 0x2ae   : > { %v895_v57 = vpop.permute.xlu1 %894 }
 0x2af   : > { %v900_v59 = vsel %vm846_vm2, %v895_v57, 0  ;;  %3335 = vmatmul.mubr.msk.bf16.vlgmr.msra.gmra.mrb[4].mxu0 %vm846_vm2, %v3977_v36 }
 0x2b0   : > { %3339 = vmatpush3.bf16.xpose.msra.mxu1 %v900_v59  ;;  %3345 = vmatpush3.bf16.xpose.msra.mxu0 %v949_v58 }
 0x2b1   : > { %3346 = vmatprep.mubr.msk.bf16.mxu0 %vm3761_vm1, %v3760_v9  ;;  %3350 = vmatprep.subr.bf16.mxu1 %v3760_v9 }
 0x2b2   : > { %3356 = vmatprep.subr.bf16.mxu0 %v3760_v9 }
 0x2b6   : > { %v993_v60 = vpop.permute.xlu1 %992 }
 0x2b7   : > { %v998_v61 = vsel %vm846_vm2, %v993_v60, 0  ;;  %3341 = vmatmul.mubr.msk.bf16.vlgmr.msra.gmra.mrb[12].mxu1 %vm846_vm2, %v3988_v45  ;;  %3347 = vmatmul.mubr.msk.bf16.vlgmr.msra.gmra.mrb[8].mxu0 %vm846_vm2, %v3979_v37 }
 0x2b8   : > { %3351 = vmatpush3.bf16.xpose.msra.mxu1 %v998_v61  ;;  %3352 = vmatprep.mubr.msk.bf16.mxu1 %vm3761_vm1, %v3760_v9 }
 0x2b9   : > { %3362 = vmatprep.subr.bf16.mxu1 %v3760_v9  ;;  %3358 = vmatprep.mubr.msk.bf16.mxu0 %vm3761_vm1, %v3760_v9 }
 0x2bf   : > { %3353 = vmatmul.mubr.msk.bf16.vlgmr.msra.gmra.mrb[16].mxu1 %vm846_vm2, %v3995_v52 }
 0x2c0   : > { %3364 = vmatprep.mubr.msk.bf16.mxu1 %vm3761_vm1, %v3760_v9 }
 0x382   : > { %v887_v2 = vpop.f32.mrb[4].mxu0 }
 0x383   : > { %v1040_v5 = vmul.f32 0.35355338, %v887_v2  ;;  %v3336_v6 = vpop.f32.mrb[5].mxu0 }
 0x384   : > { %v890_v7 = vpop.f32.mrb[6].mxu0 }
 0x385   : > { %v3337_v8 = vpop.f32.mrb[7].mxu0  ;;  %v1044_v10 = vadd.f32 %v1040_v5, %v4023_v4 }
 0x387   : > { %v1048_v11 = vsel %vm846_vm2, %v1044_v10, -inf }
 0x388   : > { %1049 = vmax.xlane.f32.xlu1 %v1048_v11 }
 0x38a   : > { %v936_v12 = vpop.f32.mrb[12].mxu1  ;;  %v985_v13 = vpop.f32.mrb[8].mxu0 }
 0x38b   : > { %v1041_v14 = vmul.f32 0.35355338, %v936_v12  ;;  %v1042_v15 = vmul.f32 0.35355338, %v985_v13  ;;  %v3342_v16 = vpop.f32.mrb[13].mxu1  ;;  %v3348_v17 = vpop.f32.mrb[9].mxu0 }
 0x38c   : > { %v939_v18 = vpop.f32.mrb[14].mxu1  ;;  %v988_v19 = vpop.f32.mrb[10].mxu0  ;;  %v1293_v16 = vld [vmem:[%s4484_s5] sm:$0xf] }
 0x38d   : > { %v3343_v20 = vpop.f32.mrb[15].mxu1  ;;  %v3349_v21 = vpop.f32.mrb[11].mxu0  ;;  %v1046_v22 = vadd.f32 %v1042_v15, %v4023_v4  ;;  %v1045_v23 = vadd.f32 %v1041_v14, %v4023_v4  ;;  %v1301_v17 = vsel %vm1101_vm4, %v1293_v16, 0  ;;  %v1294_v18 = vld [vmem:[%s4484_s5 + $0x4] sm:$0xf] }
 0x38e   : > { %v1347_v19 = vsel %vm1101_vm4, %v1294_v18, 0  ;;  %v1295_v20 = vld [vmem:[%s4484_s5 + $0x8] sm:$0xf]  ;;  %v3626_v16 = vld [vmem:[%s4490_s11] sm:$0xff]   ;;  %v3628_v18 = vld [vmem:[%s4490_s11 + $0x10] sm:$0xff]  }
 0x38f   : > { %v1054_v24 = vsel %vm846_vm2, %v1046_v22, -inf  ;;  %v1051_v25 = vsel %vm846_vm2, %v1045_v23, -inf }
 0x390   : > { %1055 = vmax.xlane.f32.xlu1 %v1054_v24  ;;  %1052 = vmax.xlane.f32.xlu0 %v1051_v25  ;;  %v1393_v24 = vsel %vm1101_vm4, %v1295_v20, 0  ;;  %v3630_v20 = vld [vmem:[%s4490_s11 + $0x20] sm:$0xff]  }
 0x392   : > { %v1034_v26 = vpop.f32.mrb[16].mxu1 }
 0x393   : > { %v1043_v27 = vmul.f32 0.35355338, %v1034_v26  ;;  %v3354_v28 = vpop.f32.mrb[17].mxu1 }
 0x394   : > { %v1037_v29 = vpop.f32.mrb[18].mxu1 }
 0x395   : > { %v3355_v30 = vpop.f32.mrb[19].mxu1  ;;  %v1047_v31 = vadd.f32 %v1043_v27, %v4023_v4  ;;  %v1296_v27 = vld [vmem:[%s4484_s5 + $0xc] sm:$0xf] }
 0x397   : > { %v1057_v32 = vsel %vm846_vm2, %v1047_v31, -inf }
 0x398   : > { %1058 = vmax.xlane.f32.xlu1 %v1057_v32 }
 0x3a6   : > { %1096 = vrot.lane.b32.xlu0 %v3977_v36, %s4499_s26 }
 0x3a9   : > { %1145 = vrot.lane.b32.xlu1 %v3988_v45, %s4499_s26 }
 0x415   : > { %v1050_v33 = vpop.xlane.xlu1 %1049 }
 0x416   : > { %v1060_v34 = vsub.f32 %v1044_v10, %v1050_v33 }
 0x418   : > { %v1064_v35 = vmul.f32 1.442695, %v1060_v34  ;;  %v1439_v34 = vsel %vm1101_vm4, %v1296_v27, 0 }
 0x41a   : > { %3656 = vpow2.f32 %v1064_v35 }
 0x41d   : > { %v1056_v38 = vpop.xlane.xlu1 %1055  ;;  %v1053_v39 = vpop.xlane.xlu0 %1052 }
 0x41e   : > { %v1062_v40 = vsub.f32 %v1046_v22, %v1056_v38  ;;  %v1061_v41 = vsub.f32 %v1045_v23, %v1053_v39 }
 0x420   : > { %v1068_v42 = vmul.f32 1.442695, %v1062_v40  ;;  %v1066_v43 = vmul.f32 1.442695, %v1061_v41 }
 0x421   : > { %v1097_v44 = vpop.permute.xlu0 %1096 }
 0x422   : > { %3658 = vpow2.f32 %v1068_v42  ;;  %v1103_v46 = vsel %vm1101_vm4, %v1097_v44, 0 }
 0x423   : > { %3660 = vpow2.f32 %v1066_v43  ;;  %3357 = vmatpush3.bf16.msra.mxu0 %v1103_v46 }
 0x424   : > { %v3657_v36 = vpop.eup %3656  ;;  %3368 = vmatprep.subr.bf16.mxu0 %v3760_v9 }
 0x425   : > { %v1059_v45 = vpop.xlane.xlu1 %1058  ;;  %v1072_v47 = vsel %vm846_vm2, %v3657_v36, 0.0 }
 0x426   : > { %v1063_v48 = vsub.f32 %v1047_v31, %v1059_v45  ;;  %1073 = vadd.xlane.f32.xlu1 %v1072_v47 }
 0x428   : > { %v1070_v49 = vmul.f32 1.442695, %v1063_v48 }
 0x429   : > { %v1146_v50 = vpop.permute.xlu1 %1145 }
 0x42a   : > { %3662 = vpow2.f32 %v1070_v49  ;;  %v1151_v51 = vsel %vm1101_vm4, %v1146_v50, 0 }
 0x42b   : > { %3363 = vmatpush3.bf16.msra.mxu1 %v1151_v51 }
 0x42c   : > { %v3659_v53 = vpop.eup %3658  ;;  %3374 = vmatprep.subr.bf16.mxu1 %v3760_v9 }
 0x42d   : > { %v3661_v54 = vpop.eup %3660  ;;  %v1078_v55 = vsel %vm846_vm2, %v3659_v53, 0.0 }
 0x42e   : > { %1079 = vadd.xlane.f32.xlu0 %v1078_v55  ;;  %v1075_v56 = vsel %vm846_vm2, %v3661_v54, 0.0 }
 0x42f   : > { %1076 = vadd.xlane.f32.xlu1 %v1075_v56 }
 0x434   : > { %v3663_v57 = vpop.eup %3662 }
 0x435   : > { %v1081_v58 = vsel %vm846_vm2, %v3663_v57, 0.0 }
 0x436   : > { %1082 = vadd.xlane.f32.xlu1 %v1081_v58 }
 0x444   : > { %1241 = vrot.lane.b32.xlu0 %v3995_v52, %s4499_s26 }
 0x447   : > { %1193 = vrot.lane.b32.xlu1 %v3979_v37, %s4499_s26 }
 0x4b3   : > { %v1074_v59 = vpop.xlane.xlu1 %1073 }
 0x4b4   : > { %3664 = vrcp.f32 %v1074_v59 }
 0x4bb   : > { %v1080_v60 = vpop.xlane.xlu0 %1079 }
 0x4bc   : > { %3666 = vrcp.f32 %v1080_v60  ;;  %v1077_v61 = vpop.xlane.xlu1 %1076 }
 0x4bd   : > { %3668 = vrcp.f32 %v1077_v61 }
 0x4be   : > { %v3665_v62 = vpop.eup %3664 }
 0x4bf   : > { %v1088_v63 = vmul.f32 %v3665_v62, %v3657_v36  ;;  %v1242_v8 = vpop.permute.xlu0 %1241 }
 0x4c0   : > { %v1247_v12 = vsel %vm1101_vm4, %v1242_v8, 0 }
 0x4c1   : > { %v1092_v1 = vpack.c.bf16 %v1088_v63, %v1088_v63 }
 0x4c3   : > { %3359 = vmatmul.mubr.msk.bf16.vlgmr.msra.gmra.mrb[12].mxu0 %vm846_vm2, %v1092_v1  ;;  %v1083_v2 = vpop.xlane.xlu1 %1082 }
 0x4c4   : > { %3670 = vrcp.f32 %v1083_v2  ;;  %3370 = vmatprep.mubr.msk.bf16.mxu0 %vm3761_vm1, %v3760_v9 }
 0x4c6   : > { %v3667_v52 = vpop.eup %3666 }
 0x4c7   : > { %v3669_v3 = vpop.eup %3668  ;;  %v1090_v5 = vmul.f32 %v3667_v52, %v3659_v53  ;;  %v1194_v37 = vpop.permute.xlu1 %1193 }
 0x4c8   : > { %v1089_v6 = vmul.f32 %v3669_v3, %v3661_v54  ;;  %v1199_v7 = vsel %vm1101_vm4, %v1194_v37, 0  ;;  %v3078_v37 = vld [vmem:[%s4485_s6] ss:$0 sm:$0xff] }
 0x4c9   : > { %3369 = vmatpush3.bf16.msra.mxu0 %v1199_v7  ;;  %v1094_v10 = vpack.c.bf16 %v1090_v5, %v1090_v5 }
 0x4ca   : > { %v1093_v11 = vpack.c.bf16 %v1089_v6, %v1089_v6  ;;  %3380 = vmatprep.subr.bf16.mxu0 %v3760_v9 }
 0x4cc   : > { %3365 = vmatmul.mubr.msk.bf16.vlgmr.msra.gmra.mrb[20].mxu1 %vm846_vm2, %v1093_v11  ;;  %3371 = vmatmul.mubr.msk.bf16.vlgmr.msra.gmra.mrb[16].mxu0 %vm846_vm2, %v1094_v10 }
 0x4cd   : > { %3375 = vmatpush3.bf16.msra.mxu1 %v1247_v12  ;;  %3376 = vmatprep.mubr.msk.bf16.mxu1 %vm3761_vm1, %v3760_v9 }
 0x4ce   : > { %v3671_v13 = vpop.eup %3670  ;;  %3382 = vmatprep.mubr.msk.bf16.mxu0 %vm3761_vm1, %v3760_v9  ;;  %3386 = vmatprep.subr.bf16.mxu1 %v3760_v9 }
 0x4cf   : > { %v1091_v14 = vmul.f32 %v3671_v13, %v3663_v57  ;;  %3381 = vmatpush3.bf16.msra.mxu0 %v1301_v17  ;;  %v3627_v17 = vld [vmem:[%s4490_s11 + $0x8] sm:$0xff]  }
 0x4d0   : > { %3392 = vmatprep.subr.bf16.mxu0 %v3760_v9 }
 0x4d1   : > { %v1095_v15 = vpack.c.bf16 %v1091_v14, %v1091_v14 }
 0x4d4   : > { %3377 = vmatmul.mubr.msk.bf16.vlgmr.msra.gmra.mrb[24].mxu1 %vm846_vm2, %v1095_v15  ;;  %v3624_v15 = vld [vmem:[%s4488_s9] sm:$0xff]  }
 0x4d5   : > { %3388 = vmatprep.mubr.msk.bf16.mxu1 %vm3761_vm1, %v3760_v9  ;;  %3387 = vmatpush3.bf16.msra.mxu1 %v1347_v19  ;;  %v3629_v19 = vld [vmem:[%s4490_s11 + $0x18] sm:$0xff]  }
 0x4d6   : > { %3398 = vmatprep.subr.bf16.mxu1 %v3760_v9 }
 0x596   : > { %v1139_v21 = vpop.f32.mrb[12].mxu0 }
 0x597   : > { %v1289_v22 = vpack.c.bf16 %v1139_v21, %v1139_v21  ;;  %v3360_v23 = vpop.f32.mrb[13].mxu0  ;;  %v3631_v21 = vld [vmem:[%s4490_s11 + $0x28] sm:$0xff]  }
 0x598   : > { %v1142_v25 = vpop.f32.mrb[14].mxu0 }
 0x599   : > { %v3361_v26 = vpop.f32.mrb[15].mxu0  ;;  %3383 = vmatmul.mubr.msk.bf16.vlgmr.msra.gmra.mrb[20].mxu0 %vm846_vm2, %v1289_v22 }
 0x59a   : > { %3393 = vmatpush3.bf16.msra.mxu0 %v1393_v24  ;;  %3394 = vmatprep.mubr.msk.bf16.mxu0 %vm3761_vm1, %v3760_v9  ;;  %v3079_v26 = vld [vmem:[%s4486_s7] ss:$0 sm:$0xff] }
 0x59b   : > { %3404 = vmatprep.subr.bf16.mxu0 %v3760_v9 }
 0x59f   : > { %v1187_v28 = vpop.f32.mrb[20].mxu1  ;;  %v1235_v29 = vpop.f32.mrb[16].mxu0 }
 0x5a0   : > { %v1290_v30 = vpack.c.bf16 %v1187_v28, %v1187_v28  ;;  %v3366_v31 = vpop.f32.mrb[21].mxu1  ;;  %v1291_v32 = vpack.c.bf16 %v1235_v29, %v1235_v29  ;;  %v3372_v33 = vpop.f32.mrb[17].mxu0  ;;  %v3080_v28 = vld [vmem:[%s4487_s8] ss:$0 sm:$0xff] }
 0x5a1   : > { %v1190_v35 = vpop.f32.mrb[22].mxu1  ;;  %v1238_v38 = vpop.f32.mrb[18].mxu0  ;;  %v3633_v33 = vld [vmem:[%s4490_s11 + $0x38] sm:$0xff]  }
 0x5a2   : > { %v3367_v39 = vpop.f32.mrb[23].mxu1  ;;  %3389 = vmatmul.mubr.msk.bf16.vlgmr.msra.gmra.mrb[28].mxu1 %vm846_vm2, %v1290_v30  ;;  %v3373_v40 = vpop.f32.mrb[19].mxu0  ;;  %3395 = vmatmul.mubr.msk.bf16.vlgmr.msra.gmra.mrb[24].mxu0 %vm846_vm2, %v1291_v32  ;;  %v3632_v32 = vld [vmem:[%s4490_s11 + $0x30] sm:$0xff]  }
 0x5a3   : > { %3399 = vmatpush3.bf16.msra.mxu1 %v1439_v34  ;;  %3400 = vmatprep.mubr.msk.bf16.mxu1 %vm3761_vm1, %v3760_v9  ;;  %v3081_v34 = vld [vmem:[%s4489_s10] ss:$0 sm:$0xff] }
 0x5a4   : > { %3408 = vmatprep.mubr.msk.bf16.mxu0 %vm3761_vm1, %v3760_v9  ;;  %3412 = vmatprep.subr.bf16.mxu1 %v3760_v9 }
 0x5a5   : > { %3405 = vmatpush3.bf16.msra.mxu0 %v3624_v15 }
 0x5a6   : > { %3406 = vmatprep.subr.bf16.mxu0 %v3760_v9 }
 0x5a7   : > { %v1283_v41 = vpop.f32.mrb[24].mxu1 }
 0x5a8   : > { %v1292_v42 = vpack.c.bf16 %v1283_v41, %v1283_v41  ;;  %v3378_v43 = vpop.f32.mrb[25].mxu1 }
 0x5a9   : > { %v1286_v44 = vpop.f32.mrb[26].mxu1 }
 0x5aa   : > { %v3379_v46 = vpop.f32.mrb[27].mxu1  ;;  %3401 = vmatmul.mubr.msk.bf16.vlgmr.msra.gmra.mrb[32].mxu1 %vm846_vm2, %v1292_v42 }
 0x5ab   : > { %3428 = vmatprep.mubr.msk.bf16.mxu1 %vm3761_vm1, %v3760_v9  ;;  %3413 = vmatpush3.bf16.msra.mxu1 %v3626_v16  ;;  %v3093_v46 = vld [vmem:[%s4491_s12] ss:$0 sm:$0xff] }
 0x5ac   : > { %3414 = vmatprep.subr.bf16.mxu1 %v3760_v9 }
 0x5af   : > { %3415 = vmatpush3.bf16.msra.mxu1 %v3627_v17 }
 0x5b0   : > { %3416 = vmatprep.subr.bf16.mxu1 %v3760_v9 }
 0x5b3   : > { %3417 = vmatpush3.bf16.msra.mxu1 %v3628_v18  ;;  %v3119_v18 = vld [vmem:[%s4483_s4 + $0x5] ss:$0 sm:$0xff] }
 0x5b4   : > { %3418 = vmatprep.subr.bf16.mxu1 %v3760_v9 }
 0x5b7   : > { %3419 = vmatpush3.bf16.msra.mxu1 %v3629_v19 }
 0x5b8   : > { %3420 = vmatprep.subr.bf16.mxu1 %v3760_v9 }
 0x5bb   : > { %3421 = vmatpush3.bf16.msra.mxu1 %v3630_v20 }
 0x5bc   : > { %3422 = vmatprep.subr.bf16.mxu1 %v3760_v9 }
 0x5bf   : > { %3423 = vmatpush3.bf16.msra.mxu1 %v3631_v21 }
 0x5c0   : > { %3424 = vmatprep.subr.bf16.mxu1 %v3760_v9 }
 0x5c3   : > { %3425 = vmatpush3.bf16.msra.mxu1 %v3632_v32  ;;  %v3121_v32 = vld [vmem:[%s4483_s4 + $0x7] ss:$0 sm:$0xff] }
 0x5c4   : > { %3426 = vmatprep.subr.bf16.mxu1 %v3760_v9 }
 0x5c7   : > { %3427 = vmatpush3.bf16.msra.mxu1 %v3633_v33 }
 0x5c8   : > { %3464 = vmatprep.subr.bf16.mxu1 %v3760_v9 }
 0x66c   : > { %v1337_v36 = vpop.f32.mrb[20].mxu0 }
 0x66d   : > { %v3384_v45 = vpop.f32.mrb[21].mxu0  ;;  %v1481_v51 = vsel %vm554_vm0, %v1337_v36, 0.0 }
 0x66e   : > { %v1340_v47 = vpop.f32.mrb[22].mxu0 }
 0x66f   : > { %v3385_v48 = vpop.f32.mrb[23].mxu0 }
 0x675   : > { %v1383_v49 = vpop.f32.mrb[28].mxu1  ;;  %v1429_v50 = vpop.f32.mrb[24].mxu0 }
 0x676   : > { %v1482_v53 = vsel %vm554_vm0, %v1383_v49, 0.0  ;;  %v3390_v54 = vpop.f32.mrb[29].mxu1  ;;  %v1484_v55 = vsel %vm554_vm0, %v1429_v50, 0.0  ;;  %v3396_v56 = vpop.f32.mrb[25].mxu0 }
 0x677   : > { %v1483_v57 = vadd.f32 %v1482_v53, %v1481_v51  ;;  %v1386_v58 = vpop.f32.mrb[30].mxu1  ;;  %v1432_v59 = vpop.f32.mrb[26].mxu0 }
 0x678   : > { %v3391_v60 = vpop.f32.mrb[31].mxu1  ;;  %v3397_v61 = vpop.f32.mrb[27].mxu0  ;;  %v3635_v58 = vld [vmem:[%s4515_s3 + $0x48] sm:$0xff]  }
 0x679   : > { %v1485_v62 = vadd.f32 %v1484_v55, %v1483_v57  ;;  %v3634_v57 = vld [vmem:[%s4515_s3 + $0x40] sm:$0xff]  }
 0x67d   : > { %v1475_v63 = vpop.f32.mrb[32].mxu1 }
 0x67e   : > { %v1486_v1 = vsel %vm554_vm0, %v1475_v63, 0.0  ;;  %v3402_v2 = vpop.f32.mrb[33].mxu1  ;;  %v3096_v63 = vld [vmem:[%s4516_s21 + $0x1] ss:$0 sm:$0xff] }
 0x67f   : > { %v1487_v52 = vadd.f32 %v1486_v1, %v1485_v62  ;;  %v1478_v3 = vpop.f32.mrb[34].mxu1  ;;  %v3097_v2 = vld [vmem:[%s4517_s2 + $0x1] ss:$0 sm:$0xff]  ;;  %s3198_s2 = sshll.u32 %s3877_s28, 7 }
 0x680   : > { %v3403_v5 = vpop.f32.mrb[35].mxu1 }
 0x681   : > { %v1488_v6 = vadd.f32 %v1487_v52, %v3909_v0  ;;  %v3625_v0 = vld [vmem:[%s4488_s9 + $0x8] sm:$0xff]   ;;  %v3636_v5 = vld [vmem:[%s4515_s3 + $0x50] sm:$0xff]  }
 0x682   : > { %3407 = vmatpush3.bf16.msra.mxu0 %v3625_v0 }
 0x683   : > { %v4105_v7 = vadd.f32 %v3078_v37, %v1488_v6  ;;  %3432 = vmatprep.subr.bf16.mxu0 %v3760_v9  ;;  %v3637_v6 = vld [vmem:[%s4515_s3 + $0x58] sm:$0xff]  }
 0x685   : > { %v1499_v8 = vsel %vm554_vm0, %v4105_v7, 0.0 }
 0x686   : > { %1500 = vadd.xlane.f32.xlu1 %v1499_v8  ;;  %v3639_v8 = vld [vmem:[%s4515_s3 + $0x68] sm:$0xff]  }
 0x713   : > { %v1501_v10 = vpop.xlane.xlu1 %1500 }
 0x714   : > { %v1502_v11 = vmul.f32 0.03125, %v1501_v10  ;;  %v3640_v10 = vld [vmem:[%s4515_s3 + $0x70] sm:$0xff]  }
 0x716   : > { %v1503_v12 = vsub.f32 %v4105_v7, %v1502_v11  ;;  %v3641_v11 = vld [vmem:[%s4515_s3 + $0x78] sm:$0xff]  }
 0x718   : > { %v1504_v13 = vmul.f32 %v1503_v12, %v1503_v12 }
 0x71a   : > { %v1505_v14 = vsel %vm554_vm0, %v1504_v13, 0.0 }
 0x71b   : > { %1506 = vadd.xlane.f32.xlu0 %v1505_v14 }
 0x7a8   : > { %v1507_v22 = vpop.xlane.xlu0 %1506 }
 0x7a9   : > { %v1508_v23 = vmul.f32 0.03125, %v1507_v22 }
 0x7ab   : > { %v1509_v24 = vadd.f32 1e-05, %v1508_v23 }
 0x7ad   : > { %3672 = vrsqrt.f32 %v1509_v24 }
 0x7b7   : > { %v3673_v25 = vpop.eup %3672 }
 0x7b8   : > { %v1511_v27 = vmul.f32 %v3673_v25, %v1503_v12  ;;  %v3118_v12 = vld [vmem:[%s4483_s4 + $0x4] ss:$0 sm:$0xff]  ;;  %v3120_v25 = vld [vmem:[%s4483_s4 + $0x6] ss:$0 sm:$0xff] }
 0x7ba   : > { %v1518_v29 = vmul.f32 %v3079_v26, %v1511_v27 }
 0x7bc   : > { %v1525_v30 = vadd.f32 %v3080_v28, %v1518_v29 }
 0x7be   : > { %v1526_v31 = vpack.c.bf16 %v1525_v30, %v1525_v30 }
 0x7c0   : > { %3409 = vmatmul.mubr.msk.bf16.vlgmr.msra.gmra.mrb[28].mxu0 %vm554_vm0, %v1526_v31 }
 0x7c1   : > { %3436 = vmatprep.mubr.msk.bf16.mxu0 %vm3761_vm1, %v3760_v9  ;;  %3433 = vmatpush3.bf16.msra.mxu0 %v3634_v57 }
 0x7c2   : > { %3434 = vmatprep.subr.bf16.mxu0 %v3760_v9 }
 0x7c5   : > { %3435 = vmatpush3.bf16.msra.mxu0 %v3635_v58 }
 0x7c6   : > { %3440 = vmatprep.subr.bf16.mxu0 %v3760_v9 }
 0x893   : > { %v1587_v35 = vpop.f32.mrb[28].mxu0 }
 0x894   : > { %v1588_v38 = vadd.f32 %v3081_v34, %v1587_v35  ;;  %v3410_v39 = vpop.f32.mrb[29].mxu0 }
 0x895   : > { %v1590_v40 = vpop.f32.mrb[30].mxu0 }
 0x896   : > { %v1593_v41 = vmax.f32 %v1588_v38, 0.0  ;;  %v3411_v42 = vpop.f32.mrb[31].mxu0 }
 0x898   : > { %v1594_v43 = vpack.c.bf16 %v1593_v41, %v1593_v41 }
 0x89a   : > { %3429 = vmatmul.mubr.bf16.vlgmr.msra.gmra.mrb[36].mxu1 %v1594_v43 }
 0x89b   : > { %3466 = vmatprep.mubr.msk.bf16.mxu1 %vm3761_vm1, %v3760_v9 }
 0x96d   : > { %v1693_v44 = vpop.f32.mrb[36].mxu1 }
 0x96e   : > { %v1699_v36 = vadd.f32 %v1693_v44, %v4105_v7  ;;  %v3430_v45 = vpop.f32.mrb[37].mxu1  ;;  %v3638_v7 = vld [vmem:[%s4515_s3 + $0x60] sm:$0xff]   ;;  %s4437_s3 = scalar_lea.hbm %s4496_s17, %s3198_s2 }
 0x96f   : > { %v1696_v47 = vpop.f32.mrb[38].mxu1 }
 0x970   : > { %v4169_v48 = vadd.f32 %v3093_v46, %v1699_v36  ;;  %v3431_v49 = vpop.f32.mrb[39].mxu1 }
 0x972   : > { %v1712_v50 = vsel %vm554_vm0, %v4169_v48, 0.0 }
 0x973   : > { %1713 = vadd.xlane.f32.xlu0 %v1712_v50 }
 0xa00   : > { %v1714_v51 = vpop.xlane.xlu0 %1713 }
 0xa01   : > { %v1715_v53 = vmul.f32 0.03125, %v1714_v51 }
 0xa03   : > { %v1716_v54 = vsub.f32 %v4169_v48, %v1715_v53 }
 0xa05   : > { %v1717_v55 = vmul.f32 %v1716_v54, %v1716_v54 }
 0xa07   : > { %v1718_v56 = vsel %vm554_vm0, %v1717_v55, 0.0 }
 0xa08   : > { %1719 = vadd.xlane.f32.xlu1 %v1718_v56 }
 0xa95   : > { %v1720_v59 = vpop.xlane.xlu1 %1719 }
 0xa96   : > { %v1721_v60 = vmul.f32 0.03125, %v1720_v59 }
 0xa98   : > { %v1722_v61 = vadd.f32 1e-05, %v1721_v60 }
 0xa9a   : > { %3674 = vrsqrt.f32 %v1722_v61 }
 0xaa4   : > { %v3675_v62 = vpop.eup %3674 }
 0xaa5   : > { %v1724_v1 = vmul.f32 %v3675_v62, %v1716_v54 }
 0xaa7   : > { %v1731_v52 = vmul.f32 %v3096_v63, %v1724_v1 }
 0xaa9   : > { %v1738_v3 = vadd.f32 %v3097_v2, %v1731_v52 }
 0xaab   : > { %v1739_v37 = vpack.c.bf16 %v1738_v3, %v1738_v3 }
 0xaad   : > { %3437 = vmatmul.mubr.msk.bf16.vlgmr.msra.gmra.mrb[32].mxu0 %vm554_vm0, %v1739_v37 }
 0xaae   : > { %3441 = vmatpush3.bf16.msra.mxu0 %v3636_v5  ;;  %3444 = vmatprep.mubr.msk.bf16.mxu0 %vm3761_vm1, %v3760_v9 }
 0xaaf   : > { %3442 = vmatprep.subr.bf16.mxu0 %v3760_v9 }
 0xab2   : > { %3443 = vmatpush3.bf16.msra.mxu0 %v3637_v6 }
 0xab3   : > { %3448 = vmatprep.subr.bf16.mxu0 %v3760_v9 }
 0xab5   : > { %3445 = vmatmul.mubr.msk.bf16.vlgmr.msra.gmra.mrb[36].mxu0 %vm554_vm0, %v1739_v37 }
 0xab6   : > { %3449 = vmatpush3.bf16.msra.mxu0 %v3638_v7  ;;  %3452 = vmatprep.mubr.msk.bf16.mxu0 %vm3761_vm1, %v3760_v9 }
 0xab7   : > { %3450 = vmatprep.subr.bf16.mxu0 %v3760_v9 }
 0xaba   : > { %3451 = vmatpush3.bf16.msra.mxu0 %v3639_v8 }
 0xabb   : > { %3456 = vmatprep.subr.bf16.mxu0 %v3760_v9 }
 0xabd   : > { %3453 = vmatmul.mubr.msk.bf16.vlgmr.msra.gmra.mrb[40].mxu0 %vm554_vm0, %v1739_v37 }
 0xabe   : > { %3457 = vmatpush3.bf16.msra.mxu0 %v3640_v10  ;;  %3460 = vmatprep.mubr.msk.bf16.mxu0 %vm3761_vm1, %v3760_v9 }
 0xabf   : > { %3458 = vmatprep.subr.bf16.mxu0 %v3760_v9 }
 0xac2   : > { %3459 = vmatpush3.bf16.msra.mxu0 %v3641_v11 }
 0xac3   : > { %3470 = vmatprep.subr.bf16.mxu0 %v3760_v9 }
 0xac5   : > { %3461 = vmatmul.mubr.msk.bf16.vlgmr.msra.gmra.mrb[44].mxu0 %vm554_vm0, %v1739_v37 }
 0xac6   : > { %3472 = vmatprep.mubr.msk.bf16.mxu0 %vm3761_vm1, %v3760_v9 }
 0xb80   : > { %v1835_v13 = vpop.f32.mrb[32].mxu0 }
 0xb81   : > { %v1836_v14 = vadd.f32 %v3118_v12, %v1835_v13  ;;  %v3438_v15 = vpop.f32.mrb[33].mxu0 }
 0xb82   : > { %v1838_v0 = vpop.f32.mrb[34].mxu0 }
 0xb83   : > { %v4228_v16 = vpack.c.bf16 %v1836_v14, %v1836_v14  ;;  %v3439_v17 = vpop.f32.mrb[35].mxu0 }
 0xb85   : > { %2002 = vrot.lane.b32.xlu0 %v4228_v16, %s4518_s19 }
 0xb88   : > { %v1887_v19 = vpop.f32.mrb[36].mxu0 }
 0xb89   : > { %v1888_v20 = vadd.f32 %v3119_v18, %v1887_v19  ;;  %v3446_v21 = vpop.f32.mrb[37].mxu0 }
 0xb8a   : > { %v1890_v22 = vpop.f32.mrb[38].mxu0 }
 0xb8b   : > { %v4235_v23 = vpack.c.bf16 %v1888_v20, %v1888_v20  ;;  %v3447_v24 = vpop.f32.mrb[39].mxu0 }
 0xb8d   : > { %2051 = vrot.lane.b32.xlu1 %v4235_v23, %s4518_s19 }
 0xb90   : > { %v1939_v26 = vpop.f32.mrb[40].mxu0 }
 0xb91   : > { %v1940_v27 = vadd.f32 %v3120_v25, %v1939_v26  ;;  %v3454_v28 = vpop.f32.mrb[41].mxu0 }
 0xb92   : > { %v1942_v29 = vpop.f32.mrb[42].mxu0 }
 0xb93   : > { %v4242_v30 = vpack.c.bf16 %v1940_v27, %v1940_v27  ;;  %v3455_v31 = vpop.f32.mrb[43].mxu0 }
 0xb95   : > { %2100 = vrot.lane.b32.xlu1 %v4242_v30, %s4518_s19 }
 0xb98   : > { %v1991_v33 = vpop.f32.mrb[44].mxu0 }
 0xb99   : > { %v1992_v34 = vadd.f32 %v3121_v32, %v1991_v33  ;;  %v3462_v35 = vpop.f32.mrb[45].mxu0 }
 0xb9a   : > { %v1994_v38 = vpop.f32.mrb[46].mxu0 }
 0xb9b   : > { %v4249_v39 = vpack.c.bf16 %v1992_v34, %v1992_v34  ;;  %v3463_v40 = vpop.f32.mrb[47].mxu0 }
 0xb9d   : > { %2149 = vrot.lane.b32.xlu0 %v4249_v39, %s4518_s19  ;;  %s2970_s19 = scalar_lea.sflag [#allocation3], %s537_s30 }
 0xbf7   : > { %v2003_v41 = vpop.permute.xlu0 %2002 }
 0xbf8   : > { %v2008_v42 = vsel %vm846_vm2, %v2003_v41, 0 }
 0xbf9   : > { %3465 = vmatpush3.bf16.xpose.msra.mxu1 %v2008_v42 }
 0xbfa   : > { %3476 = vmatprep.subr.bf16.mxu1 %v3760_v9 }
 0xbff   : > { %v2052_v43 = vpop.permute.xlu1 %2051 }
 0xc00   : > { %v2057_v44 = vsel %vm846_vm2, %v2052_v43, 0  ;;  %3467 = vmatmul.mubr.msk.bf16.vlgmr.msra.gmra.mrb[40].mxu1 %vm846_vm2, %v4228_v16 }
 0xc01   : > { %3471 = vmatpush3.bf16.xpose.msra.mxu0 %v2057_v44  ;;  %3478 = vmatprep.mubr.msk.bf16.mxu1 %vm3761_vm1, %v3760_v9 }
 0xc02   : > { %3482 = vmatprep.subr.bf16.mxu0 %v3760_v9 }
 0xc07   : > { %v2101_v46 = vpop.permute.xlu1 %2100 }
 0xc08   : > { %v2106_v36 = vsel %vm846_vm2, %v2101_v46, 0  ;;  %3473 = vmatmul.mubr.msk.bf16.vlgmr.msra.gmra.mrb[48].mxu0 %vm846_vm2, %v4235_v23 }
 0xc09   : > { %3477 = vmatpush3.bf16.xpose.msra.mxu1 %v2106_v36  ;;  %3484 = vmatprep.mubr.msk.bf16.mxu0 %vm3761_vm1, %v3760_v9 }
 0xc0a   : > { %3488 = vmatprep.subr.bf16.mxu1 %v3760_v9 }
 0xc0f   : > { %v2150_v45 = vpop.permute.xlu0 %2149 }
 0xc10   : > { %v2155_v47 = vsel %vm846_vm2, %v2150_v45, 0  ;;  %3479 = vmatmul.mubr.msk.bf16.vlgmr.msra.gmra.mrb[44].mxu1 %vm846_vm2, %v4242_v30 }
 0xc11   : > { %3483 = vmatpush3.bf16.xpose.msra.mxu0 %v2155_v47  ;;  %3490 = vmatprep.mubr.msk.bf16.mxu1 %vm3761_vm1, %v3760_v9 }
 0xc12   : > { %3494 = vmatprep.subr.bf16.mxu0 %v3760_v9 }
 0xc18   : > { %3485 = vmatmul.mubr.msk.bf16.vlgmr.msra.gmra.mrb[52].mxu0 %vm846_vm2, %v4249_v39 }
 0xc19   : > { %3496 = vmatprep.mubr.msk.bf16.mxu0 %vm3761_vm1, %v3760_v9 }
 0xcd3   : > { %v2044_v49 = vpop.f32.mrb[40].mxu1 }
 0xcd4   : > { %v2197_v50 = vmul.f32 0.35355338, %v2044_v49  ;;  %v3468_v51 = vpop.f32.mrb[41].mxu1 }
 0xcd5   : > { %v2047_v53 = vpop.f32.mrb[42].mxu1 }
 0xcd6   : > { %v3469_v54 = vpop.f32.mrb[43].mxu1  ;;  %v2201_v55 = vadd.f32 %v2197_v50, %v4023_v4 }
 0xcd8   : > { %v2205_v56 = vsel %vm846_vm2, %v2201_v55, -inf }
 0xcd9   : > { %2206 = vmax.xlane.f32.xlu1 %v2205_v56 }
 0xcdb   : > { %v2093_v57 = vpop.f32.mrb[48].mxu0 }
 0xcdc   : > { %v2198_v58 = vmul.f32 0.35355338, %v2093_v57  ;;  %v3474_v59 = vpop.f32.mrb[49].mxu0 }
 0xcdd   : > { %v2096_v60 = vpop.f32.mrb[50].mxu0 }
 0xcde   : > { %v3475_v61 = vpop.f32.mrb[51].mxu0  ;;  %v2202_v62 = vadd.f32 %v2198_v58, %v4023_v4  ;;  %v3142_v60 = vld [vmem:[%s4484_s5 + $0x10] sm:$0xf] }
 0xcdf   : > { %v2458_v61 = vsel %vm1101_vm4, %v3142_v60, 0  ;;  %v3645_v60 = vld [vmem:[%s4490_s11 + $0x48] sm:$0xff]  }
 0xce0   : > { %v2208_v63 = vsel %vm846_vm2, %v2202_v62, -inf }
 0xce1   : > { %2209 = vmax.xlane.f32.xlu0 %v2208_v63 }
 0xce3   : > { %v2142_v1 = vpop.f32.mrb[44].mxu1 }
 0xce4   : > { %v2199_v2 = vmul.f32 0.35355338, %v2142_v1  ;;  %v3480_v52 = vpop.f32.mrb[45].mxu1  ;;  %v3144_v1 = vld [vmem:[%s4484_s5 + $0x18] sm:$0xf] }
 0xce5   : > { %v2145_v3 = vpop.f32.mrb[46].mxu1 }
 0xce6   : > { %v3481_v5 = vpop.f32.mrb[47].mxu1  ;;  %v2203_v37 = vadd.f32 %v2199_v2, %v4023_v4 }
 0xce7   : > { %v2550_v5 = vsel %vm1101_vm4, %v3144_v1, 0  ;;  %v3649_v1 = vld [vmem:[%s4490_s11 + $0x68] sm:$0xff]  }
 0xce8   : > { %v2211_v6 = vsel %vm846_vm2, %v2203_v37, -inf }
 0xce9   : > { %2212 = vmax.xlane.f32.xlu0 %v2211_v6 }
 0xceb   : > { %v2191_v7 = vpop.f32.mrb[52].mxu0 }
 0xcec   : > { %v2200_v8 = vmul.f32 0.35355338, %v2191_v7  ;;  %v3486_v10 = vpop.f32.mrb[53].mxu0  ;;  %v3145_v7 = vld [vmem:[%s4484_s5 + $0x1c] sm:$0xf] }
 0xced   : > { %v2194_v11 = vpop.f32.mrb[54].mxu0 }
 0xcee   : > { %v3487_v12 = vpop.f32.mrb[55].mxu0  ;;  %v2204_v13 = vadd.f32 %v2200_v8, %v4023_v4 }
 0xcef   : > { %v2596_v12 = vsel %vm1101_vm4, %v3145_v7, 0  ;;  %v3155_v7 = vld [vmem:[%s4487_s8 + $0x1] ss:$0 sm:$0xff] }
 0xcf0   : > { %v2214_v14 = vsel %vm846_vm2, %v2204_v13, -inf }
 0xcf1   : > { %2215 = vmax.xlane.f32.xlu1 %v2214_v14 }
 0xcff   : > { %2253 = vrot.lane.b32.xlu0 %v4228_v16, %s4519_s18 }
 0xd02   : > { %2301 = vrot.lane.b32.xlu1 %v4235_v23, %s4519_s18 }
 0xd66   : > { %v2207_v15 = vpop.xlane.xlu1 %2206 }
 0xd67   : > { %v2217_v0 = vsub.f32 %v2201_v55, %v2207_v15 }
 0xd69   : > { %v2221_v17 = vmul.f32 1.442695, %v2217_v0 }
 0xd6b   : > { %3676 = vpow2.f32 %v2221_v17 }
 0xd6e   : > { %v2210_v18 = vpop.xlane.xlu0 %2209 }
 0xd6f   : > { %v2218_v19 = vsub.f32 %v2202_v62, %v2210_v18  ;;  %v3143_v62 = vld [vmem:[%s4484_s5 + $0x14] sm:$0xf] }
 0xd70   : > { %v2504_v63 = vsel %vm1101_vm4, %v3143_v62, 0  ;;  %v3647_v62 = vld [vmem:[%s4490_s11 + $0x58] sm:$0xff]  }
 0xd71   : > { %v2223_v20 = vmul.f32 1.442695, %v2218_v19 }
 0xd73   : > { %3678 = vpow2.f32 %v2223_v20 }
 0xd75   : > { %v3677_v21 = vpop.eup %3676 }
 0xd76   : > { %v2213_v22 = vpop.xlane.xlu0 %2212  ;;  %v2229_v4 = vsel %vm846_vm2, %v3677_v21, 0.0 }
 0xd77   : > { %v2219_v24 = vsub.f32 %v2203_v37, %v2213_v22  ;;  %2230 = vadd.xlane.f32.xlu0 %v2229_v4 }
 0xd79   : > { %v2225_v25 = vmul.f32 1.442695, %v2219_v24 }
 0xd7a   : > { %v2254_v26 = vpop.permute.xlu0 %2253 }
 0xd7b   : > { %3680 = vpow2.f32 %v2225_v25  ;;  %v2259_v16 = vsel %vm1101_vm4, %v2254_v26, 0 }
 0xd7c   : > { %3489 = vmatpush3.bf16.msra.mxu1 %v2259_v16 }
 0xd7d   : > { %v3679_v23 = vpop.eup %3678  ;;  %3500 = vmatprep.subr.bf16.mxu1 %v3760_v9 }
 0xd7e   : > { %v2216_v27 = vpop.xlane.xlu1 %2215  ;;  %v2232_v28 = vsel %vm846_vm2, %v3679_v23, 0.0 }
 0xd7f   : > { %v2220_v29 = vsub.f32 %v2204_v13, %v2216_v27  ;;  %2233 = vadd.xlane.f32.xlu1 %v2232_v28 }
 0xd81   : > { %v2227_v31 = vmul.f32 1.442695, %v2220_v29 }
 0xd82   : > { %v2302_v32 = vpop.permute.xlu1 %2301 }
 0xd83   : > { %3682 = vpow2.f32 %v2227_v31  ;;  %v2307_v33 = vsel %vm1101_vm4, %v2302_v32, 0 }
 0xd84   : > { %3495 = vmatpush3.bf16.msra.mxu0 %v2307_v33 }
 0xd85   : > { %v3681_v34 = vpop.eup %3680  ;;  %3506 = vmatprep.subr.bf16.mxu0 %v3760_v9 }
 0xd86   : > { %v2235_v35 = vsel %vm846_vm2, %v3681_v34, 0.0 }
 0xd87   : > { %2236 = vadd.xlane.f32.xlu0 %v2235_v35 }
 0xd8d   : > { %v3683_v38 = vpop.eup %3682 }
 0xd8e   : > { %v2238_v40 = vsel %vm846_vm2, %v3683_v38, 0.0 }
 0xd8f   : > { %2239 = vadd.xlane.f32.xlu1 %v2238_v40 }
 0xd9d   : > { %2397 = vrot.lane.b32.xlu0 %v4249_v39, %s4519_s18 }
 0xda0   : > { %2349 = vrot.lane.b32.xlu1 %v4242_v30, %s4519_s18  ;;  %s3046_s18 = sshll.u32 %s537_s30, 3 }
 0xda1   : > { %s539_s26 = scalar_lea.vmem [#allocation2], %s3046_s18  ;;  %s3765_s18 = smov [#allocation2]  }
 0xda2   : > { %s2983_s0 = sshll.u32 %s539_s26, 4  ;;  %s3700_s22 = sshll.u32 %s3765_s18, 4  ;;  %s4439_s0 = int_to_ptr.vmem [resolvable:$true] %s2983_s0  ;;  %s3701_s22 = int_to_ptr.vmem [resolvable:$false] %s3700_s22 }
 0xda3   : > { %s3696_s28 = scalar_lea.vmem %s4439_s0, 128  ;;  %s3702_s23 = scalar_lea.vmem %s3701_s22, 256 }
 0xda4   : > { %p3697_p11 = scmp.ne.s32.totalorder %s4439_s0, %s3696_s28  ;;  %p3703_p0 = scmp.lt.s32.totalorder %s4439_s0, %s3701_s22 }
 0xda5   : > { %p3704_p1 = scmp.lt.s32.totalorder %s3702_s23, %s3696_s28 }
 0xda6   : > { %p3698_p12 = pnand %p3697_p11, %p3894_p5 }
 0xda7   : > { %p3705_p2 = por %p3704_p1, %p3703_p0 }
 0xda8   : > { %p3699_p13 = pneg %p3698_p12 }
 0xdaa   : > { %p3706_p3 = pnand %p3705_p2, %p3699_p13 }
 0xe04   : > { %v2231_v41 = vpop.xlane.xlu0 %2230 }
 0xe05   : > { %3684 = vrcp.f32 %v2231_v41 }
 0xe0c   : > { %v2234_v42 = vpop.xlane.xlu1 %2233 }
 0xe0d   : > { %3686 = vrcp.f32 %v2234_v42 }
 0xe0f   : > { %v3685_v43 = vpop.eup %3684 }
 0xe10   : > { %v2245_v44 = vmul.f32 %v3685_v43, %v3677_v21 }
 0xe12   : > { %v2249_v46 = vpack.c.bf16 %v2245_v44, %v2245_v44 }
 0xe14   : > { %3491 = vmatmul.mubr.msk.bf16.vlgmr.msra.gmra.mrb[48].mxu1 %vm846_vm2, %v2249_v46  ;;  %v2237_v36 = vpop.xlane.xlu0 %2236 }
 0xe15   : > { %3688 = vrcp.f32 %v2237_v36  ;;  %3502 = vmatprep.mubr.msk.bf16.mxu1 %vm3761_vm1, %v3760_v9 }
 0xe17   : > { %v3687_v45 = vpop.eup %3686 }
 0xe18   : > { %v2246_v47 = vmul.f32 %v3687_v45, %v3679_v23  ;;  %v2398_v39 = vpop.permute.xlu0 %2397 }
 0xe19   : > { %v2403_v30 = vsel %vm1101_vm4, %v2398_v39, 0 }
 0xe1a   : > { %v2250_v49 = vpack.c.bf16 %v2246_v47, %v2246_v47 }
 0xe1c   : > { %3497 = vmatmul.mubr.msk.bf16.vlgmr.msra.gmra.mrb[56].mxu0 %vm846_vm2, %v2250_v49  ;;  %v2240_v50 = vpop.xlane.xlu1 %2239  ;;  %v3151_v49 = vld [vmem:[%s4485_s6 + $0x1] ss:$0 sm:$0xff] }
 0xe1d   : > { %3690 = vrcp.f32 %v2240_v50  ;;  %3507 = vmatpush3.bf16.msra.mxu0 %v2403_v30  ;;  %3508 = vmatprep.mubr.msk.bf16.mxu0 %vm3761_vm1, %v3760_v9 }
 0xe1e   : > { %3518 = vmatprep.subr.bf16.mxu0 %v3760_v9 }
 0xe1f   : > { %v3689_v51 = vpop.eup %3688 }
 0xe20   : > { %v2247_v53 = vmul.f32 %v3689_v51, %v3681_v34  ;;  %v2350_v54 = vpop.permute.xlu1 %2349 }
 0xe21   : > { %v2355_v55 = vsel %vm1101_vm4, %v2350_v54, 0 }
 0xe22   : > { %3501 = vmatpush3.bf16.msra.mxu1 %v2355_v55  ;;  %v2251_v56 = vpack.c.bf16 %v2247_v53, %v2247_v53 }
 0xe23   : > { %3512 = vmatprep.subr.bf16.mxu1 %v3760_v9 }
 0xe25   : > { %3503 = vmatmul.mubr.msk.bf16.vlgmr.msra.gmra.mrb[52].mxu1 %vm846_vm2, %v2251_v56 }
 0xe26   : > { %3514 = vmatprep.mubr.msk.bf16.mxu1 %vm3761_vm1, %v3760_v9  ;;  %3513 = vmatpush3.bf16.msra.mxu1 %v2458_v61  ;;  %v3646_v61 = vld [vmem:[%s4490_s11 + $0x50] sm:$0xff]  }
 0xe27   : > { %v3691_v57 = vpop.eup %3690  ;;  %3524 = vmatprep.subr.bf16.mxu1 %v3760_v9 }
 0xe28   : > { %v2248_v58 = vmul.f32 %v3691_v57, %v3683_v38 }
 0xe2a   : > { %v2252_v59 = vpack.c.bf16 %v2248_v58, %v2248_v58  ;;  %v3642_v58 = vld [vmem:[%s4488_s9 + $0x10] sm:$0xff]  }
 0xe2c   : > { %3509 = vmatmul.mubr.msk.bf16.vlgmr.msra.gmra.mrb[60].mxu0 %vm846_vm2, %v2252_v59  ;;  %v3644_v59 = vld [vmem:[%s4490_s11 + $0x40] sm:$0xff]  }
 0xe2d   : > { %3520 = vmatprep.mubr.msk.bf16.mxu0 %vm3761_vm1, %v3760_v9  ;;  %3519 = vmatpush3.bf16.msra.mxu0 %v2504_v63  ;;  %v3648_v63 = vld [vmem:[%s4490_s11 + $0x60] sm:$0xff]  }
 0xe2e   : > { %3530 = vmatprep.subr.bf16.mxu0 %v3760_v9 }
 0xee7   : > { %v2295_v2 = vpop.f32.mrb[48].mxu1 }
 0xee8   : > { %v2445_v52 = vpack.c.bf16 %v2295_v2, %v2295_v2  ;;  %v3492_v3 = vpop.f32.mrb[49].mxu1 }
 0xee9   : > { %v2298_v37 = vpop.f32.mrb[50].mxu1 }
 0xeea   : > { %v3493_v6 = vpop.f32.mrb[51].mxu1  ;;  %3515 = vmatmul.mubr.msk.bf16.vlgmr.msra.gmra.mrb[56].mxu1 %vm846_vm2, %v2445_v52  ;;  %v3154_v37 = vld [vmem:[%s4486_s7 + $0x1] ss:$0 sm:$0xff] }
 0xeeb   : > { %3525 = vmatpush3.bf16.msra.mxu1 %v2550_v5  ;;  %3526 = vmatprep.mubr.msk.bf16.mxu1 %vm3761_vm1, %v3760_v9 }
 0xeec   : > { %3536 = vmatprep.subr.bf16.mxu1 %v3760_v9 }
 0xeef   : > { %v2343_v8 = vpop.f32.mrb[56].mxu0 }
 0xef0   : > { %v2446_v10 = vpack.c.bf16 %v2343_v8, %v2343_v8  ;;  %v3498_v11 = vpop.f32.mrb[57].mxu0 }
 0xef1   : > { %v2346_v13 = vpop.f32.mrb[58].mxu0 }
 0xef2   : > { %v3499_v14 = vpop.f32.mrb[59].mxu0  ;;  %3521 = vmatmul.mubr.msk.bf16.vlgmr.msra.gmra.mrb[64].mxu0 %vm846_vm2, %v2446_v10  ;;  %v3651_v13 = vld [vmem:[%s4490_s11 + $0x78] sm:$0xff]  }
 0xef3   : > { %3531 = vmatpush3.bf16.msra.mxu0 %v2596_v12  ;;  %3532 = vmatprep.mubr.msk.bf16.mxu0 %vm3761_vm1, %v3760_v9  ;;  %v3650_v12 = vld [vmem:[%s4490_s11 + $0x70] sm:$0xff]   ;;  %v3161_v14 = vld [vmem:[%s4489_s10 + $0x1] ss:$0 sm:$0xff] }
 0xef4   : > { %3544 = vmatprep.subr.bf16.mxu0 %v3760_v9 }
 0xef8   : > { %v2391_v15 = vpop.f32.mrb[52].mxu1 }
 0xef9   : > { %v2447_v0 = vpack.c.bf16 %v2391_v15, %v2391_v15  ;;  %v3504_v17 = vpop.f32.mrb[53].mxu1 }
 0xefa   : > { %v2394_v18 = vpop.f32.mrb[54].mxu1 }
 0xefb   : > { %v3505_v19 = vpop.f32.mrb[55].mxu1  ;;  %3527 = vmatmul.mubr.msk.bf16.vlgmr.msra.gmra.mrb[60].mxu1 %vm846_vm2, %v2447_v0 }
 0xefc   : > { %3540 = vmatprep.mubr.msk.bf16.mxu1 %vm3761_vm1, %v3760_v9  ;;  %3537 = vmatpush3.bf16.msra.mxu1 %v3642_v58 }
 0xefd   : > { %3538 = vmatprep.subr.bf16.mxu1 %v3760_v9 }
 0xeff   : > { %v2439_v20 = vpop.f32.mrb[60].mxu0 }
 0xf00   : > { %v2448_v21 = vpack.c.bf16 %v2439_v20, %v2439_v20  ;;  %v3510_v22 = vpop.f32.mrb[61].mxu0 }
 0xf01   : > { %v2442_v4 = vpop.f32.mrb[62].mxu0 }
 0xf02   : > { %v3511_v24 = vpop.f32.mrb[63].mxu0  ;;  %3533 = vmatmul.mubr.msk.bf16.vlgmr.msra.gmra.mrb[68].mxu0 %vm846_vm2, %v2448_v21  ;;  %v3190_v4 = vld [vmem:[%s4491_s12 + $0x1] ss:$0 sm:$0xff] }
 0xf03   : > { %3560 = vmatprep.mubr.msk.bf16.mxu0 %vm3761_vm1, %v3760_v9  ;;  %3545 = vmatpush3.bf16.msra.mxu0 %v3644_v59 }
 0xf04   : > { %3546 = vmatprep.subr.bf16.mxu0 %v3760_v9 }
 0xf07   : > { %3547 = vmatpush3.bf16.msra.mxu0 %v3645_v60 }
 0xf08   : > { %3548 = vmatprep.subr.bf16.mxu0 %v3760_v9 }
 0xf0b   : > { %3549 = vmatpush3.bf16.msra.mxu0 %v3646_v61 }
 0xf0c   : > { %3550 = vmatprep.subr.bf16.mxu0 %v3760_v9 }
 0xf0f   : > { %3551 = vmatpush3.bf16.msra.mxu0 %v3647_v62 }
 0xf10   : > { %3552 = vmatprep.subr.bf16.mxu0 %v3760_v9 }
 0xf13   : > { %3553 = vmatpush3.bf16.msra.mxu0 %v3648_v63 }
 0xf14   : > { %3554 = vmatprep.subr.bf16.mxu0 %v3760_v9 }
 0xf17   : > { %3555 = vmatpush3.bf16.msra.mxu0 %v3649_v1 }
 0xf18   : > { %3556 = vmatprep.subr.bf16.mxu0 %v3760_v9 }
 0xf1b   : > { %3557 = vmatpush3.bf16.msra.mxu0 %v3650_v12 }
 0xf1c   : > { %3558 = vmatprep.subr.bf16.mxu0 %v3760_v9 }
 0xf1f   : > { %3559 = vmatpush3.bf16.msra.mxu0 %v3651_v13 }
 0xfbd   : > { %v2494_v25 = vpop.f32.mrb[56].mxu1 }
 0xfbe   : > { %v3516_v26 = vpop.f32.mrb[57].mxu1  ;;  %v2638_v28 = vsel %vm554_vm0, %v2494_v25, 0.0 }
 0xfbf   : > { %v2497_v16 = vpop.f32.mrb[58].mxu1 }
 0xfc0   : > { %v3517_v23 = vpop.f32.mrb[59].mxu1 }
 0xfc5   : > { %v2540_v27 = vpop.f32.mrb[64].mxu0 }
 0xfc6   : > { %v2639_v29 = vsel %vm554_vm0, %v2540_v27, 0.0  ;;  %v3522_v31 = vpop.f32.mrb[65].mxu0 }
 0xfc7   : > { %v2640_v32 = vadd.f32 %v2639_v29, %v2638_v28  ;;  %v2543_v33 = vpop.f32.mrb[66].mxu0 }
 0xfc8   : > { %v3523_v34 = vpop.f32.mrb[67].mxu0 }
 0xfc9   : > { %v3652_v34 = vld [vmem:[%s4494_s15] sm:$0xff]  }
 0xfce   : > { %v2586_v35 = vpop.f32.mrb[60].mxu1 }
 0xfcf   : > { %v2641_v38 = vsel %vm554_vm0, %v2586_v35, 0.0  ;;  %v3528_v40 = vpop.f32.mrb[61].mxu1  ;;  %v3653_v35 = vld [vmem:[%s4494_s15 + $0x8] sm:$0xff]  }
 0xfd0   : > { %v2642_v41 = vadd.f32 %v2641_v38, %v2640_v32  ;;  %v2589_v42 = vpop.f32.mrb[62].mxu1 }
 0xfd1   : > { %v3529_v43 = vpop.f32.mrb[63].mxu1 }
 0xfd2   : > { %v3191_v43 = vld [vmem:[%s4492_s13] ss:$0 sm:$0xff] }
 0xfd5   : > { %v2632_v44 = vpop.f32.mrb[68].mxu0 }
 0xfd6   : > { %v2643_v46 = vsel %vm554_vm0, %v2632_v44, 0.0  ;;  %v3534_v36 = vpop.f32.mrb[69].mxu0 }
 0xfd7   : > { %v2644_v45 = vadd.f32 %v2643_v46, %v2642_v41  ;;  %v2635_v47 = vpop.f32.mrb[70].mxu0  ;;  %v3192_v46 = vld [vmem:[%s4493_s14] ss:$0 sm:$0xff] }
 0xfd8   : > { %v3535_v39 = vpop.f32.mrb[71].mxu0 }
 0xfd9   : > { %v2645_v30 = vadd.f32 %v2644_v45, %v4169_v48  ;;  %v3643_v48 = vld [vmem:[%s4488_s9 + $0x18] sm:$0xff]  }
 0xfda   : > { %3539 = vmatpush3.bf16.msra.mxu1 %v3643_v48 }
 0xfdb   : > { %v2654_v50 = vadd.f32 %v3151_v49, %v2645_v30  ;;  %3564 = vmatprep.subr.bf16.mxu1 %v3760_v9 }
 0xfdd   : > { %v2659_v51 = vsel %vm554_vm0, %v2654_v50, 0.0 }
 0xfde   : > { %2660 = vadd.xlane.f32.xlu1 %v2659_v51 }
0x106b   : > { %v2661_v53 = vpop.xlane.xlu1 %2660 }
0x106c   : > { %v2662_v54 = vmul.f32 0.03125, %v2661_v53 }
0x106e   : > { %v2663_v55 = vsub.f32 %v2654_v50, %v2662_v54 }
0x1070   : > { %v2664_v56 = vmul.f32 %v2663_v55, %v2663_v55 }
0x1072   : > { %v2665_v57 = vsel %vm554_vm0, %v2664_v56, 0.0 }
0x1073   : > { %2666 = vadd.xlane.f32.xlu0 %v2665_v57 }
0x1100   : > { %v2667_v2 = vpop.xlane.xlu0 %2666 }
0x1101   : > { %v2668_v52 = vmul.f32 0.03125, %v2667_v2 }
0x1103   : > { %v2669_v3 = vadd.f32 1e-05, %v2668_v52 }
0x1105   : > { %3692 = vrsqrt.f32 %v2669_v3 }
0x110f   : > { %v3693_v5 = vpop.eup %3692 }
0x1110   : > { %v2671_v6 = vmul.f32 %v3693_v5, %v2663_v55 }
0x1112   : > { %v2678_v8 = vmul.f32 %v3154_v37, %v2671_v6 }
0x1114   : > { %v2685_v10 = vadd.f32 %v3155_v7, %v2678_v8 }
0x1116   : > { %v2686_v11 = vpack.c.bf16 %v2685_v10, %v2685_v10 }
0x1118   : > { %3541 = vmatmul.mubr.msk.bf16.vlgmr.msra.gmra.mrb[64].mxu1 %vm554_vm0, %v2686_v11 }
0x1119   : > { %3568 = vmatprep.mubr.msk.bf16.mxu1 %vm3761_vm1, %v3760_v9  ;;  %3565 = vmatpush3.bf16.msra.mxu1 %v3652_v34 }
0x111a   : > { %3566 = vmatprep.subr.bf16.mxu1 %v3760_v9  ;;  %v3193_v9 = vld [vmem:[%s4495_s16] ss:$0 sm:$0xff] }
0x111d   : > { %3567 = vmatpush3.bf16.msra.mxu1 %v3653_v35 }
0x11eb   : > { %v2749_v15 = vpop.f32.mrb[64].mxu1 }
0x11ec   : > { %v2750_v0 = vadd.f32 %v3161_v14, %v2749_v15  ;;  %v3542_v17 = vpop.f32.mrb[65].mxu1 }
0x11ed   : > { %v2752_v18 = vpop.f32.mrb[66].mxu1 }
0x11ee   : > { %v2755_v19 = vmax.f32 %v2750_v0, 0.0  ;;  %v3543_v20 = vpop.f32.mrb[67].mxu1 }
0x11f0   : > { %v2756_v21 = vpack.c.bf16 %v2755_v19, %v2755_v19 }
0x11f2   : > { %3561 = vmatmul.mubr.bf16.vlgmr.msra.gmra.mrb[72].mxu0 %v2756_v21 }
0x12c5   : > { %v2856_v22 = vpop.f32.mrb[72].mxu0 }
0x12c6   : > { %v2862_v24 = vadd.f32 %v2856_v22, %v2654_v50  ;;  %v3562_v25 = vpop.f32.mrb[73].mxu0 }
0x12c7   : > { %v2859_v26 = vpop.f32.mrb[74].mxu0 }
0x12c8   : > { %v3563_v16 = vpop.f32.mrb[75].mxu0  ;;  %v2871_v23 = vadd.f32 %v3190_v4, %v2862_v24 }
0x12ca   : > { %v2874_v27 = vsel %vm554_vm0, %v2871_v23, 0.0 }
0x12cb   : > { %2875 = vadd.xlane.f32.xlu0 %v2874_v27 }
0x1358   : > { %v2876_v28 = vpop.xlane.xlu0 %2875 }
0x1359   : > { %v2877_v29 = vmul.f32 0.03125, %v2876_v28 }
0x135b   : > { %v2878_v31 = vsub.f32 %v2871_v23, %v2877_v29 }
0x135d   : > { %v2879_v32 = vmul.f32 %v2878_v31, %v2878_v31 }
0x135f   : > { %v2880_v33 = vsel %vm554_vm0, %v2879_v32, 0.0 }
0x1360   : > { %2881 = vadd.xlane.f32.xlu1 %v2880_v33 }
0x13ed   : > { %v2882_v38 = vpop.xlane.xlu1 %2881 }
0x13ee   : > { %v2883_v40 = vmul.f32 0.03125, %v2882_v38 }
0x13f0   : > { %v2884_v41 = vadd.f32 1e-05, %v2883_v40 }
0x13f2   : > { %3694 = vrsqrt.f32 %v2884_v41 }
0x13fc   : > { %v3695_v42 = vpop.eup %3694 }
0x13fd   : > { %v2886_v44 = vmul.f32 %v3695_v42, %v2878_v31 }
0x13ff   : > { %v2893_v36 = vmul.f32 %v3191_v43, %v2886_v44 }
0x1401   : > { %v2900_v45 = vadd.f32 %v3192_v46, %v2893_v36 }
0x1403   : > { %v2901_v47 = vpack.c.bf16 %v2900_v45, %v2900_v45 }
0x1405   : > { %3569 = vmatmul.mubr.msk.bf16.vlgmr.msra.gmra.mrb[68].mxu1 %vm554_vm0, %v2901_v47 }
0x14d8   : > { %v2962_v39 = vpop.f32.mrb[68].mxu1 }
0x14d9   : > { %v2963_v49 = vadd.f32 %v3193_v9, %v2962_v39  ;;  %v3570_v30 = vpop.f32.mrb[69].mxu1 }
0x14da   : > { %v2965_v50 = vpop.f32.mrb[70].mxu1 }
0x14db   : > { %2968 = vst [vmem:[%s539_s26] sm:$0xff] %v2963_v49  ;;  %v3571_v51 = vpop.f32.mrb[71].mxu1 }
0x14dc   : > { %3709 = shalt.err (!%p3706_p3)
}
0x14dd   : > { %s3710_s2 = scalar_lea.hbm %s4437_s3, 128  ;;  %s3714_s29 = scalar_lea.hbm %s4496_s17, 256 }
0x14de   : > { %p3711_p4 = scmp.ne.s32.totalorder %s4437_s3, %s3710_s2  ;;  %p3715_p9 = scmp.lt.u32.totalorder %s4437_s3, %s4496_s17 }
0x14df   : > { %p3716_p10 = scmp.lt.u32.totalorder %s3714_s29, %s3710_s2  ;;  %p3718_p12 = scmp.lt.u32.totalorder %s3710_s2, %s4437_s3 }
0x14e0   : > { %p3712_p7 = pnand %p3711_p4, %p3894_p5 }
0x14e1   : > { %p3717_p11 = por %p3716_p10, %p3715_p9 }
0x14e2   : > { %p3713_p8 = pneg %p3712_p7 }
0x14e3   : > { %p3719_p13 = por %p3718_p12, %p3717_p11 }
0x14e5   : > { %p3720_p0 = pnand %p3719_p13, %p3713_p8 }
0x14e7   : > { %3723 = shalt.err (!%p3720_p0)
}
0x14e8   : > { %3572 = dma.vmem_to_hbm [thread:$0]  (%p3894_p5), %s4439_s0, 128, %s4437_s3, %s2970_s19  }
0x14e9 PF: > { %p3578_p1 = scmp.ge.s32.totalorder %s3758_s27, 2  ;;  %s2995_s28 = sand.u32 1, %s3746_s24  }
0x14ea   : > { %s2996_s23 = scalar_lea.sflag [#allocation3], %s2995_s28 }
0x14eb   : > { %p3575_p2 = pnand %p3578_p1, %p3898_p6 }
0x14ed   : > { %3741 = dma.done.wait (!%p3575_p2), %s2996_s23, 128  }
0x14ee   : > { %3743 = vsyncadd (!%p3575_p2), %s2996_s23, 4294967168  ;;  %s4520_s27 = sld [smem:[#allocation6_spill]]  ;;  %s4521_s2 = sld [smem:[#allocation5_spill]] }
0x14ef   : > { %s4522_s26 = sld [smem:[#allocation7_spill]]  ;;  %s4523_s24 = smov %s3750_s25 }
0x14f4   : > { %p27_p3 = scmp.ge.s32.totalorder %s4520_s27, 4   ;;  %s4524_s25 = smov %s4521_s2 }
0x14f6   :  { %29 = sbr.rel (!%p27_p3) target bundleno = 8 (0x8), region = 135 }
0x14fd   :  { %3001 = vsyncpa [#allocation3], 1 }
0x14fe   :  { %3003 = vsyncpa [#allocation3 + $0x1], 1 }

</bundles_post_ra>
